<compile_context>
chip_gen: v7x
topology: tpu7x:2x2x1
jax: 0.10.0
libtpu: 0.0.40
codegen_flags: <defaults>
</compile_context>

<pallas_src>
import functools
import numpy as np
import jax
import jax.numpy as jnp
from jax.experimental import pallas as pl
from jax.experimental.pallas import tpu as pltpu

BN_EPS = 1e-5
VMEM_LIMIT = 40 * 1024 * 1024  # safe on v7x (64 MiB/TC) and v5e/v6e (128 MiB)


def _pick_lane_tile(n, max_tile=2048):
    """Lane-dim tile: a multiple of 128 that divides n, else the full extent."""
    if n <= max_tile:
        return n
    for t in range(max_tile - (max_tile % 128), 127, -128):
        if n % t == 0:
            return t
    return n


# ----------------------------------------------------------------------------
# Kernel A: fused  conv1(1x1)+bn1+relu -> conv2(3x3,pad1)+bn2+relu -> conv3(1x1)+bn3
#           plus SE global-average-pool channel sums.  One grid step per image.
# The 3x3 conv runs on row-form y1 (spatial rows on sublanes): the horizontal
# (+-1) shifts are built once as masked shifted copies in VMEM, the vertical
# pad is a zero-row concat, and the 9 taps are accumulated matmuls on windows
# at offsets that are multiples of W.  No HBM im2col / pad / slice passes.
# ----------------------------------------------------------------------------
def _fused_conv_kernel(x_ref, w1_ref, sh1_ref, w2_ref, sh2_ref, w3_ref, sh3_ref,
                       y3_ref, pool_ref, *, H, W):
    P = H * W
    planes = w1_ref.shape[0]

    # conv1 + bn1 + relu, channels-first (no transpose of the big x block).
    x_bf = x_ref[0].astype(jnp.bfloat16)                              # (Cin, P)
    y1t = jnp.dot(w1_ref[...], x_bf, preferred_element_type=jnp.float32)
    y1t = jnp.maximum(y1t + sh1_ref[...], 0.0)                        # (planes, P)
    y1 = jnp.transpose(y1t).astype(jnp.bfloat16)                      # (P, planes) rows

    # Horizontal-shift buffers (dw = -1, 0, +1) with column-boundary masking,
    # each vertically zero-padded by one image row (W rows) top & bottom.
    col = jax.lax.broadcasted_iota(jnp.int32, (P, 1), 0) % W
    zrow = jnp.zeros((1, planes), jnp.bfloat16)
    zpad = jnp.zeros((W, planes), jnp.bfloat16)

    shift_m1 = jnp.concatenate([zrow, y1[:P - 1, :]], axis=0)         # y1[f-1]
    buf_m1 = jnp.where(col != 0, shift_m1, jnp.zeros_like(shift_m1))
    shift_p1 = jnp.concatenate([y1[1:, :], zrow], axis=0)             # y1[f+1]
    buf_p1 = jnp.where(col != W - 1, shift_p1, jnp.zeros_like(shift_p1))

    bufs = (jnp.concatenate([zpad, buf_m1, zpad], axis=0),            # kw = 0
            jnp.concatenate([zpad, y1,     zpad], axis=0),            # kw = 1
            jnp.concatenate([zpad, buf_p1, zpad], axis=0))            # kw = 2

    # conv2 (3x3) + bn2 + relu: 9 accumulated matmuls on aligned row windows.
    acc = jnp.zeros((P, planes), jnp.float32)
    for kh in range(3):
        for kw in range(3):
            win = bufs[kw][kh * W: kh * W + P, :]                     # (P, planes)
            acc = acc + jnp.dot(win, w2_ref[kh * 3 + kw],
                                preferred_element_type=jnp.float32)
    y2 = jnp.maximum(acc + sh2_ref[...], 0.0).astype(jnp.bfloat16)    # (P, planes)

    # conv3 + bn3 in channels-first orientation (A @ B^T), fused SE pool sums.
    y3t = jax.lax.dot_general(w3_ref[...], y2, (((1,), (1,)), ((), ())),
                              preferred_element_type=jnp.float32)
    y3t = y3t + sh3_ref[...]                                          # (C, P)
    pool_ref[...] = jnp.sum(y3t, axis=1, keepdims=True)[None]         # (1, C, 1)
    y3_ref[...] = y3t[None].astype(jnp.bfloat16)                      # (1, C, P)


def fused_conv_stage(x3, w1, sh1, w2, sh2, w3, sh3, H, W):
    N, Cin, P = x3.shape
    planes = w1.shape[0]
    C = w3.shape[0]
    return pl.pallas_call(
        functools.partial(_fused_conv_kernel, H=H, W=W),
        out_shape=(jax.ShapeDtypeStruct((N, C, P), jnp.bfloat16),
                   jax.ShapeDtypeStruct((N, C, 1), jnp.float32)),
        grid=(N,),
        in_specs=[
            pl.BlockSpec((1, Cin, P), lambda n: (n, 0, 0)),
            pl.BlockSpec((planes, Cin), lambda n: (0, 0)),
            pl.BlockSpec((planes, 1), lambda n: (0, 0)),
            pl.BlockSpec((9, planes, planes), lambda n: (0, 0, 0)),
            pl.BlockSpec((1, planes), lambda n: (0, 0)),
            pl.BlockSpec((C, planes), lambda n: (0, 0)),
            pl.BlockSpec((C, 1), lambda n: (0, 0)),
        ],
        out_specs=(pl.BlockSpec((1, C, P), lambda n: (n, 0, 0)),
                   pl.BlockSpec((1, C, 1), lambda n: (n, 0, 0))),
        compiler_params=pltpu.CompilerParams(
            dimension_semantics=("parallel",),
            vmem_limit_bytes=VMEM_LIMIT),
    )(x3, w1, sh1, w2, sh2, w3, sh3)
    # TODO(synk): for very large H*W, add an H-tiled grid with a 1-row halo so the
    # per-step working set is image-size independent and pipelines more deeply.


# ----------------------------------------------------------------------------
# Kernel B: SE gate (conv4 + relu -> conv5 + sigmoid, recomputed per tile --
# two tiny matvecs) fused with  out = relu(gate * y3 + residual).
# Everything stays in NCHW orientation; lane-dense (1, C, tp) streaming tiles.
# ----------------------------------------------------------------------------
def _se_gate_residual_kernel(pool_ref, w4_ref, b4_ref, w5_ref, b5_ref,
                             y3_ref, res_ref, out_ref, *, inv_p):
    pooled = pool_ref[0] * inv_p                                      # (C, 1) mean
    h = jnp.dot(w4_ref[...], pooled, preferred_element_type=jnp.float32) + b4_ref[...]
    h = jnp.maximum(h, 0.0)                                           # (Cr, 1)
    g = jnp.dot(w5_ref[...], h, preferred_element_type=jnp.float32) + b5_ref[...]
    gate = jax.nn.sigmoid(g)                                          # (C, 1)
    out = gate * y3_ref[0].astype(jnp.float32) + res_ref[0]           # (C, tp)
    out_ref[...] = jnp.maximum(out, 0.0)[None]


def se_gate_residual(pool, w4, b4, w5, b5, y3, res, inv_p):
    N, C, P = y3.shape
    Cr = w4.shape[0]
    tp = _pick_lane_tile(P)
    return pl.pallas_call(
        functools.partial(_se_gate_residual_kernel, inv_p=inv_p),
        out_shape=jax.ShapeDtypeStruct((N, C, P), jnp.float32),
        grid=(N, P // tp),
        in_specs=[
            pl.BlockSpec((1, C, 1), lambda n, p: (n, 0, 0)),
            pl.BlockSpec((Cr, C), lambda n, p: (0, 0)),
            pl.BlockSpec((Cr, 1), lambda n, p: (0, 0)),
            pl.BlockSpec((C, Cr), lambda n, p: (0, 0)),
            pl.BlockSpec((C, 1), lambda n, p: (0, 0)),
            pl.BlockSpec((1, C, tp), lambda n, p: (n, 0, p)),
            pl.BlockSpec((1, C, tp), lambda n, p: (n, 0, p)),
        ],
        out_specs=pl.BlockSpec((1, C, tp), lambda n, p: (n, 0, p)),
        compiler_params=pltpu.CompilerParams(
            dimension_semantics=("parallel", "parallel"),
            vmem_limit_bytes=VMEM_LIMIT),
    )(pool, w4, b4, w5, b5, y3, res)


# ----------------------------------------------------------------------------
# Parameters (deterministic, PyTorch-shaped) and the full forward pass.
# ----------------------------------------------------------------------------
def init_params(key, inplanes, planes):
    C = planes * 4                  # expansion = 4
    Cr = C // 16                    # compress_rate = 16
    ks = jax.random.split(key, 10)

    def rnd(k, shape, s=0.1):
        return s * jax.random.normal(k, shape, jnp.float32)

    def bn(k, ch):
        k1, k2, k3, k4 = jax.random.split(k, 4)
        gamma = 1.0 + 0.1 * jax.random.normal(k1, (ch,), jnp.float32)
        beta = 0.1 * jax.random.normal(k2, (ch,), jnp.float32)
        mean = 0.1 * jax.random.normal(k3, (ch,), jnp.float32)
        var = jax.random.uniform(k4, (ch,), jnp.float32, minval=0.5, maxval=1.5)
        return gamma, beta, mean, var

    return {
        "w1": rnd(ks[0], (planes, inplanes, 1, 1)),
        "w2": rnd(ks[1], (planes, planes, 3, 3)),
        "w3": rnd(ks[2], (C, planes, 1, 1)),
        "w4": rnd(ks[3], (Cr, C, 1, 1)), "b4": rnd(ks[4], (Cr,)),
        "w5": rnd(ks[5], (C, Cr, 1, 1)), "b5": rnd(ks[6], (C,)),
        "bn1": bn(ks[7], planes),
        "bn2": bn(ks[8], planes),
        "bn3": bn(ks[9], C),
    }


def _bn_scale_shift(bn):
    gamma, beta, mean, var = bn
    scale = gamma / jnp.sqrt(var + BN_EPS)   # eval-mode BatchNorm folded
    shift = beta - mean * scale
    return scale, shift


def bottleneck_forward(x_nchw, p):
    N, Cin, H, W = x_nchw.shape
    planes = p["w1"].shape[0]
    C = p["w3"].shape[0]
    Cr = p["w4"].shape[0]
    P = H * W
    # stride=1, downsample=None configuration => residual == x directly.
    # TODO(synk): stride>1 / downsample branch is None in this module config; not implemented.
    assert Cin == C
    # TODO(synk): avg_pool2d(kernel_size=H) is a global pool only when H == W (module usage).

    s1, sh1 = _bn_scale_shift(p["bn1"])
    s2, sh2 = _bn_scale_shift(p["bn2"])
    s3, sh3 = _bn_scale_shift(p["bn3"])

    # BN scales folded into bf16 weights; shifts kept as f32 bias vectors.
    w1_cf = (p["w1"].reshape(planes, Cin) * s1[:, None]).astype(jnp.bfloat16)
    sh1_col = sh1[:, None]
    w2_t = jnp.transpose(p["w2"], (2, 3, 1, 0)).reshape(9, planes, planes)
    w2_t = (w2_t * s2[None, None, :]).astype(jnp.bfloat16)
    sh2_row = sh2[None, :]
    w3_cf = (p["w3"].reshape(C, planes) * s3[:, None]).astype(jnp.bfloat16)
    sh3_col = sh3[:, None]
    w4_cf = p["w4"].reshape(Cr, C)
    b4_col = p["b4"][:, None]
    w5_cf = p["w5"].reshape(C, Cr)
    b5_col = p["b5"][:, None]

    x3 = x_nchw.reshape(N, Cin, P)   # native NCHW layout, free reshape

    # conv1 -> conv2 -> conv3 (+BNs, relus) + SE pool sums, one fused kernel.
    y3, pool = fused_conv_stage(x3, w1_cf, sh1_col, w2_t, sh2_row, w3_cf, sh3_col, H, W)

    # SE FCs + gate * y3 + residual + relu, one fused streaming kernel (NCHW out).
    out = se_gate_residual(pool, w4_cf, b4_col, w5_cf, b5_col, y3, x3, 1.0 / P)
    return out.reshape(N, C, H, W)


# ----------------------------------------------------------------------------
# Pure-JAX reference (lax.conv, NCHW, f32) for correctness checking.
# ----------------------------------------------------------------------------
def ref_forward(x, p):
    def conv(v, w, padding=((0, 0), (0, 0)), bias=None):
        y = jax.lax.conv_general_dilated(
            v, w, (1, 1), padding, dimension_numbers=("NCHW", "OIHW", "NCHW"))
        if bias is not None:
            y = y + bias[None, :, None, None]
        return y

    def bn(v, prm):
        gamma, beta, mean, var = prm
        return ((v - mean[None, :, None, None])
                / jnp.sqrt(var[None, :, None, None] + BN_EPS)
                * gamma[None, :, None, None] + beta[None, :, None, None])

    relu = lambda v: jnp.maximum(v, 0.0)
    out = relu(bn(conv(x, p["w1"]), p["bn1"]))
    out = relu(bn(conv(out, p["w2"], padding=((1, 1), (1, 1))), p["bn2"]))
    out = bn(conv(out, p["w3"]), p["bn3"])
    pooled = jnp.mean(out, axis=(2, 3), keepdims=True)
    g = relu(conv(pooled, p["w4"], bias=p["b4"]))
    g = jax.nn.sigmoid(conv(g, p["w5"], bias=p["b5"]))
    return relu(g * out + x)


if __name__ == "__main__":
    key = jax.random.PRNGKey(0)
    kx, kp = jax.random.split(key)

    N, H, W = 2, 8, 8
    planes = 16
    inplanes = planes * 4          # 64, so residual adds without downsample

    x = jax.random.normal(kx, (N, inplanes, H, W), jnp.float32)
    params = init_params(kp, inplanes, planes)

    out = jax.jit(lambda v: bottleneck_forward(v, params))(x)
    out = jax.block_until_ready(out)

    ref = ref_forward(x, params)
    # bf16 MXU path + bf16 y3 intermediate => bf16-appropriate tolerance
    np.testing.assert_allclose(np.asarray(out), np.asarray(ref),
                               rtol=5e-2, atol=5e-2)
    print("KERNEL_OK")
</pallas_src>

<mosaic_0001>
module attributes {stable_mosaic.version = 11 : i64} {
  func.func @_se_gate_residual_kernel(%arg0: i32, %arg1: i32, %arg2: memref<1x64x1xf32, #tpu.memory_space<vmem>>, %arg3: memref<4x64xf32, #tpu.memory_space<vmem>>, %arg4: memref<4x1xf32, #tpu.memory_space<vmem>>, %arg5: memref<64x4xf32, #tpu.memory_space<vmem>>, %arg6: memref<64x1xf32, #tpu.memory_space<vmem>>, %arg7: memref<1x64x64xbf16, #tpu.memory_space<vmem>>, %arg8: memref<1x64x64xf32, #tpu.memory_space<vmem>>, %arg9: memref<1x64x64xf32, #tpu.memory_space<vmem>>) attributes {dimension_semantics = [#tpu.dimension_semantics<parallel>, #tpu.dimension_semantics<parallel>], iteration_bounds = array<i64: 2, 1>, scalar_prefetch = 0 : i64, scratch_operands = 0 : i64, tpu.core_type = #tpu.core_type<tc>, window_params = [{transform_indices = @transform_0, window_bounds = array<i64: 1, 64, 1>}, {pipeline_mode = #tpu.pipeline_mode<synchronous>, transform_indices = @transform_1, window_bounds = array<i64: 4, 64>}, {pipeline_mode = #tpu.pipeline_mode<synchronous>, transform_indices = @transform_2, window_bounds = array<i64: 4, 1>}, {pipeline_mode = #tpu.pipeline_mode<synchronous>, transform_indices = @transform_3, window_bounds = array<i64: 64, 4>}, {pipeline_mode = #tpu.pipeline_mode<synchronous>, transform_indices = @transform_4, window_bounds = array<i64: 64, 1>}, {transform_indices = @transform_5, window_bounds = array<i64: 1, 64, 64>}, {transform_indices = @transform_6, window_bounds = array<i64: 1, 64, 64>}, {transform_indices = @transform_7, window_bounds = array<i64: 1, 64, 64>}]} {
    %c0 = arith.constant 0 : index
    %c0_0 = arith.constant 0 : index
    %c0_1 = arith.constant 0 : index
    %0 = vector.load %arg2[%c0, %c0_0, %c0_1] : memref<1x64x1xf32, #tpu.memory_space<vmem>>, vector<1x64x1xf32>
    %1 = vector.shape_cast %0 : vector<1x64x1xf32> to vector<64x1xf32>
    %cst = arith.constant 1.562500e-02 : f32
    %2 = vector.broadcast %cst : f32 to vector<64x1xf32>
    %3 = arith.mulf %1, %2 : vector<64x1xf32>
    %c0_2 = arith.constant 0 : index
    %c0_3 = arith.constant 0 : index
    %4 = vector.load %arg3[%c0_2, %c0_3] : memref<4x64xf32, #tpu.memory_space<vmem>>, vector<4x64xf32>
    %cst_4 = arith.constant dense<0.000000e+00> : vector<4x1xf32>
    %5 = tpu.matmul %4, %3, %cst_4 {dimension_numbers = #tpu.dot_dimension_numbers<[1], [0], [0], [1], [0, 0, 1, 1], [], []>} : vector<4x64xf32>, vector<64x1xf32>, vector<4x1xf32> -> vector<4x1xf32>
    %c0_5 = arith.constant 0 : index
    %c0_6 = arith.constant 0 : index
    %6 = vector.load %arg4[%c0_5, %c0_6] : memref<4x1xf32, #tpu.memory_space<vmem>>, vector<4x1xf32>
    %7 = arith.addf %5, %6 : vector<4x1xf32>
    %cst_7 = arith.constant 0.000000e+00 : f32
    %8 = vector.broadcast %cst_7 : f32 to vector<4x1xf32>
    %9 = arith.maximumf %7, %8 : vector<4x1xf32>
    %c0_8 = arith.constant 0 : index
    %c0_9 = arith.constant 0 : index
    %10 = vector.load %arg5[%c0_8, %c0_9] : memref<64x4xf32, #tpu.memory_space<vmem>>, vector<64x4xf32>
    %cst_10 = arith.constant dense<0.000000e+00> : vector<64x1xf32>
    %11 = tpu.matmul %10, %9, %cst_10 {dimension_numbers = #tpu.dot_dimension_numbers<[1], [0], [0], [1], [0, 0, 1, 1], [], []>} : vector<64x4xf32>, vector<4x1xf32>, vector<64x1xf32> -> vector<64x1xf32>
    %c0_11 = arith.constant 0 : index
    %c0_12 = arith.constant 0 : index
    %12 = vector.load %arg6[%c0_11, %c0_12] : memref<64x1xf32, #tpu.memory_space<vmem>>, vector<64x1xf32>
    %13 = arith.addf %11, %12 : vector<64x1xf32>
    %14 = arith.negf %13 : vector<64x1xf32>
    %15 = math.exp %14 : vector<64x1xf32>
    %cst_13 = arith.constant 1.000000e+00 : f32
    %16 = vector.broadcast %cst_13 : f32 to vector<64x1xf32>
    %17 = arith.addf %16, %15 : vector<64x1xf32>
    %18 = arith.divf %16, %17 : vector<64x1xf32>
    %c0_14 = arith.constant 0 : index
    %c0_15 = arith.constant 0 : index
    %c0_16 = arith.constant 0 : index
    %19 = vector.load %arg7[%c0_14, %c0_15, %c0_16] : memref<1x64x64xbf16, #tpu.memory_space<vmem>>, vector<1x64x64xbf16>
    %20 = vector.shape_cast %19 : vector<1x64x64xbf16> to vector<64x64xbf16>
    %21 = arith.extf %20 : vector<64x64xbf16> to vector<64x64xf32>
    %22 = vector.broadcast %18 : vector<64x1xf32> to vector<64x64xf32>
    %23 = arith.mulf %22, %21 : vector<64x64xf32>
    %c0_17 = arith.constant 0 : index
    %c0_18 = arith.constant 0 : index
    %c0_19 = arith.constant 0 : index
    %24 = vector.load %arg8[%c0_17, %c0_18, %c0_19] : memref<1x64x64xf32, #tpu.memory_space<vmem>>, vector<1x64x64xf32>
    %25 = vector.shape_cast %24 : vector<1x64x64xf32> to vector<64x64xf32>
    %26 = arith.addf %23, %25 : vector<64x64xf32>
    %cst_20 = arith.constant 0.000000e+00 : f32
    %27 = vector.broadcast %cst_20 : f32 to vector<64x64xf32>
    %28 = arith.maximumf %26, %27 : vector<64x64xf32>
    %29 = vector.shape_cast %28 : vector<64x64xf32> to vector<1x64x64xf32>
    %c0_21 = arith.constant 0 : index
    %c0_22 = arith.constant 0 : index
    %c0_23 = arith.constant 0 : index
    %30 = vector.load %arg9[%c0_21, %c0_22, %c0_23] : memref<1x64x64xf32, #tpu.memory_space<vmem>>, vector<1x64x64xf32>
    tpu.vector_store %arg9[%c0_21, %c0_22, %c0_23], %29 {strides = array<i32>} : memref<1x64x64xf32, #tpu.memory_space<vmem>>, vector<1x64x64xf32>,
    return
  }
  func.func @transform_0(%arg0: i32, %arg1: i32) -> (i32, i32, i32) {
    %c0_i32 = arith.constant 0 : i32
    %c0_i32_0 = arith.constant 0 : i32
    %c0_i32_1 = arith.constant 0 : i32
    return %arg0, %c0_i32, %c0_i32_0 : i32, i32, i32
  }
  func.func @transform_1(%arg0: i32, %arg1: i32) -> (i32, i32) {
    %c0_i32 = arith.constant 0 : i32
    %c0_i32_0 = arith.constant 0 : i32
    %c0_i32_1 = arith.constant 0 : i32
    return %c0_i32, %c0_i32_0 : i32, i32
  }
  func.func @transform_2(%arg0: i32, %arg1: i32) -> (i32, i32) {
    %c0_i32 = arith.constant 0 : i32
    %c0_i32_0 = arith.constant 0 : i32
    %c0_i32_1 = arith.constant 0 : i32
    return %c0_i32, %c0_i32_0 : i32, i32
  }
  func.func @transform_3(%arg0: i32, %arg1: i32) -> (i32, i32) {
    %c0_i32 = arith.constant 0 : i32
    %c0_i32_0 = arith.constant 0 : i32
    %c0_i32_1 = arith.constant 0 : i32
    return %c0_i32, %c0_i32_0 : i32, i32
  }
  func.func @transform_4(%arg0: i32, %arg1: i32) -> (i32, i32) {
    %c0_i32 = arith.constant 0 : i32
    %c0_i32_0 = arith.constant 0 : i32
    %c0_i32_1 = arith.constant 0 : i32
    return %c0_i32, %c0_i32_0 : i32, i32
  }
  func.func @transform_5(%arg0: i32, %arg1: i32) -> (i32, i32, i32) {
    %c0_i32 = arith.constant 0 : i32
    %c0_i32_0 = arith.constant 0 : i32
    return %arg0, %c0_i32, %arg1 : i32, i32, i32
  }
  func.func @transform_6(%arg0: i32, %arg1: i32) -> (i32, i32, i32) {
    %c0_i32 = arith.constant 0 : i32
    %c0_i32_0 = arith.constant 0 : i32
    return %arg0, %c0_i32, %arg1 : i32, i32, i32
  }
  func.func @transform_7(%arg0: i32, %arg1: i32) -> (i32, i32, i32) {
    %c0_i32 = arith.constant 0 : i32
    %c0_i32_0 = arith.constant 0 : i32
    return %arg0, %c0_i32, %arg1 : i32, i32, i32
  }
}

module attributes {stable_mosaic.version = 11 : i64} {
  func.func @_fused_conv_kernel(%arg0: i32, %arg1: memref<1x64x64xf32, #tpu.memory_space<vmem>>, %arg2: memref<16x64xbf16, #tpu.memory_space<vmem>>, %arg3: memref<16x1xf32, #tpu.memory_space<vmem>>, %arg4: memref<9x16x16xbf16, #tpu.memory_space<vmem>>, %arg5: memref<1x16xf32, #tpu.memory_space<vmem>>, %arg6: memref<64x16xbf16, #tpu.memory_space<vmem>>, %arg7: memref<64x1xf32, #tpu.memory_space<vmem>>, %arg8: memref<1x64x64xbf16, #tpu.memory_space<vmem>>, %arg9: memref<1x64x1xf32, #tpu.memory_space<vmem>>) attributes {dimension_semantics = [#tpu.dimension_semantics<parallel>], iteration_bounds = array<i64: 2>, scalar_prefetch = 0 : i64, scratch_operands = 0 : i64, tpu.core_type = #tpu.core_type<tc>, window_params = [{transform_indices = @transform_0, window_bounds = array<i64: 1, 64, 64>}, {pipeline_mode = #tpu.pipeline_mode<synchronous>, transform_indices = @transform_1, window_bounds = array<i64: 16, 64>}, {pipeline_mode = #tpu.pipeline_mode<synchronous>, transform_indices = @transform_2, window_bounds = array<i64: 16, 1>}, {pipeline_mode = #tpu.pipeline_mode<synchronous>, transform_indices = @transform_3, window_bounds = array<i64: 9, 16, 16>}, {pipeline_mode = #tpu.pipeline_mode<synchronous>, transform_indices = @transform_4, window_bounds = array<i64: 1, 16>}, {pipeline_mode = #tpu.pipeline_mode<synchronous>, transform_indices = @transform_5, window_bounds = array<i64: 64, 16>}, {pipeline_mode = #tpu.pipeline_mode<synchronous>, transform_indices = @transform_6, window_bounds = array<i64: 64, 1>}, {transform_indices = @transform_7, window_bounds = array<i64: 1, 64, 64>}, {transform_indices = @transform_8, window_bounds = array<i64: 1, 64, 1>}]} {
    %c0 = arith.constant 0 : index
    %c0_0 = arith.constant 0 : index
    %c0_1 = arith.constant 0 : index
    %0 = vector.load %arg1[%c0, %c0_0, %c0_1] : memref<1x64x64xf32, #tpu.memory_space<vmem>>, vector<1x64x64xf32>
    %1 = vector.shape_cast %0 : vector<1x64x64xf32> to vector<64x64xf32>
    %2 = arith.truncf %1 : vector<64x64xf32> to vector<64x64xbf16>
    %c0_2 = arith.constant 0 : index
    %c0_3 = arith.constant 0 : index
    %3 = vector.load %arg2[%c0_2, %c0_3] : memref<16x64xbf16, #tpu.memory_space<vmem>>, vector<16x64xbf16>
    %cst = arith.constant dense<0.000000e+00> : vector<16x64xf32>
    %4 = tpu.matmul %3, %2, %cst {dimension_numbers = #tpu.dot_dimension_numbers<[1], [0], [0], [1], [0, 0, 1, 1], [], []>} : vector<16x64xbf16>, vector<64x64xbf16>, vector<16x64xf32> -> vector<16x64xf32>
    %c0_4 = arith.constant 0 : index
    %c0_5 = arith.constant 0 : index
    %5 = vector.load %arg3[%c0_4, %c0_5] : memref<16x1xf32, #tpu.memory_space<vmem>>, vector<16x1xf32>
    %6 = vector.broadcast %5 : vector<16x1xf32> to vector<16x64xf32>
    %7 = arith.addf %4, %6 : vector<16x64xf32>
    %cst_6 = arith.constant 0.000000e+00 : f32
    %8 = vector.broadcast %cst_6 : f32 to vector<16x64xf32>
    %9 = arith.maximumf %7, %8 : vector<16x64xf32>
    %10 = tpu.transpose %9, [1, 0] : vector<16x64xf32> -> vector<64x16xf32>
    %11 = arith.truncf %10 : vector<64x16xf32> to vector<64x16xbf16>
    %12 = tpu.iota {dimensions = array<i32: 0>} : vector<64x1xi32>
    %c8_i32 = arith.constant 8 : i32
    %c0_i32 = arith.constant 0 : i32
    %13 = arith.cmpi eq, %c8_i32, %c0_i32 : i32
    %c1_i32 = arith.constant 1 : i32
    %14 = arith.select %13, %c1_i32, %c8_i32 : i32
    %15 = vector.broadcast %14 : i32 to vector<64x1xi32>
    %16 = arith.remsi %12, %15 : vector<64x1xi32>
    %c0_i32_7 = arith.constant 0 : i32
    %17 = vector.broadcast %c0_i32_7 : i32 to vector<64x1xi32>
    %18 = arith.cmpi ne, %16, %17 : vector<64x1xi32>
    %c0_i32_8 = arith.constant 0 : i32
    %19 = vector.broadcast %c0_i32_8 : i32 to vector<64x1xi32>
    %20 = arith.cmpi slt, %16, %19 : vector<64x1xi32>
    %c0_i32_9 = arith.constant 0 : i32
    %21 = arith.cmpi slt, %14, %c0_i32_9 : i32
    %22 = vector.broadcast %21 : i1 to vector<64x1xi1>
    %23 = vector.broadcast %22 : vector<64x1xi1> to vector<64x1xi1>
    %24 = arith.xori %20, %23 : vector<64x1xi1>
    %25 = arith.andi %24, %18 : vector<64x1xi1>
    %26 = vector.broadcast %14 : i32 to vector<64x1xi32>
    %27 = arith.addi %16, %26 : vector<64x1xi32>
    %28 = arith.select %25, %27, %16 : vector<64x1xi1>, vector<64x1xi32>
    %cst_10 = arith.constant 0.000000e+00 : bf16
    %29 = vector.broadcast %cst_10 : bf16 to vector<1x16xbf16>
    %cst_11 = arith.constant 0.000000e+00 : bf16
    %30 = vector.broadcast %cst_11 : bf16 to vector<8x16xbf16>
    %31 = vector.extract_strided_slice %11 {offsets = [0, 0], sizes = [63, 16], strides = [1, 1]} : vector<64x16xbf16> to vector<63x16xbf16>
    %32 = tpu.concatenate %29, %31 in 0 : vector<1x16xbf16>, vector<63x16xbf16> -> vector<64x16xbf16>
    %c0_i32_12 = arith.constant 0 : i32
    %33 = vector.broadcast %c0_i32_12 : i32 to vector<64x1xi32>
    %34 = arith.cmpi ne, %28, %33 : vector<64x1xi32>
    %cst_13 = arith.constant 0.000000e+00 : bf16
    %35 = vector.broadcast %cst_13 : bf16 to vector<64x16xbf16>
    %36 = vector.shape_cast %34 : vector<64x1xi1> to vector<64x1xi1>
    %37 = vector.broadcast %36 : vector<64x1xi1> to vector<64x16xi1>
    %38 = arith.select %37, %32, %35 : vector<64x16xi1>, vector<64x16xbf16>
    %39 = vector.extract_strided_slice %11 {offsets = [1, 0], sizes = [63, 16], strides = [1, 1]} : vector<64x16xbf16> to vector<63x16xbf16>
    %40 = tpu.concatenate %39, %29 in 0 : vector<63x16xbf16>, vector<1x16xbf16> -> vector<64x16xbf16>
    %c7_i32 = arith.constant 7 : i32
    %41 = vector.broadcast %c7_i32 : i32 to vector<64x1xi32>
    %42 = arith.cmpi ne, %28, %41 : vector<64x1xi32>
    %cst_14 = arith.constant 0.000000e+00 : bf16
    %43 = vector.broadcast %cst_14 : bf16 to vector<64x16xbf16>
    %44 = vector.shape_cast %42 : vector<64x1xi1> to vector<64x1xi1>
    %45 = vector.broadcast %44 : vector<64x1xi1> to vector<64x16xi1>
    %46 = arith.select %45, %40, %43 : vector<64x16xi1>, vector<64x16xbf16>
    %47 = tpu.concatenate %30, %38, %30 in 0 : vector<8x16xbf16>, vector<64x16xbf16>, vector<8x16xbf16> -> vector<80x16xbf16>
    %48 = tpu.concatenate %30, %11, %30 in 0 : vector<8x16xbf16>, vector<64x16xbf16>, vector<8x16xbf16> -> vector<80x16xbf16>
    %49 = tpu.concatenate %30, %46, %30 in 0 : vector<8x16xbf16>, vector<64x16xbf16>, vector<8x16xbf16> -> vector<80x16xbf16>
    %cst_15 = arith.constant 0.000000e+00 : f32
    %50 = vector.broadcast %cst_15 : f32 to vector<64x16xf32>
    %51 = vector.extract_strided_slice %47 {offsets = [0, 0], sizes = [64, 16], strides = [1, 1]} : vector<80x16xbf16> to vector<64x16xbf16>
    %c0_16 = arith.constant 0 : index
    %c0_17 = arith.constant 0 : index
    %c0_18 = arith.constant 0 : index
    %52 = vector.load %arg4[%c0_16, %c0_17, %c0_18] : memref<9x16x16xbf16, #tpu.memory_space<vmem>>, vector<1x16x16xbf16>
    %53 = vector.shape_cast %52 : vector<1x16x16xbf16> to vector<16x16xbf16>
    %cst_19 = arith.constant dense<0.000000e+00> : vector<64x16xf32>
    %54 = tpu.matmul %51, %53, %cst_19 {dimension_numbers = #tpu.dot_dimension_numbers<[1], [0], [0], [1], [0, 0, 1, 1], [], []>} : vector<64x16xbf16>, vector<16x16xbf16>, vector<64x16xf32> -> vector<64x16xf32>
    %55 = arith.addf %50, %54 : vector<64x16xf32>
    %56 = vector.extract_strided_slice %48 {offsets = [0, 0], sizes = [64, 16], strides = [1, 1]} : vector<80x16xbf16> to vector<64x16xbf16>
    %c1 = arith.constant 1 : index
    %c0_20 = arith.constant 0 : index
    %c0_21 = arith.constant 0 : index
    %57 = vector.load %arg4[%c1, %c0_20, %c0_21] : memref<9x16x16xbf16, #tpu.memory_space<vmem>>, vector<1x16x16xbf16>
    %58 = vector.shape_cast %57 : vector<1x16x16xbf16> to vector<16x16xbf16>
    %cst_22 = arith.constant dense<0.000000e+00> : vector<64x16xf32>
    %59 = tpu.matmul %56, %58, %cst_22 {dimension_numbers = #tpu.dot_dimension_numbers<[1], [0], [0], [1], [0, 0, 1, 1], [], []>} : vector<64x16xbf16>, vector<16x16xbf16>, vector<64x16xf32> -> vector<64x16xf32>
    %60 = arith.addf %55, %59 : vector<64x16xf32>
    %61 = vector.extract_strided_slice %49 {offsets = [0, 0], sizes = [64, 16], strides = [1, 1]} : vector<80x16xbf16> to vector<64x16xbf16>
    %c2 = arith.constant 2 : index
    %c0_23 = arith.constant 0 : index
    %c0_24 = arith.constant 0 : index
    %62 = vector.load %arg4[%c2, %c0_23, %c0_24] : memref<9x16x16xbf16, #tpu.memory_space<vmem>>, vector<1x16x16xbf16>
    %63 = vector.shape_cast %62 : vector<1x16x16xbf16> to vector<16x16xbf16>
    %cst_25 = arith.constant dense<0.000000e+00> : vector<64x16xf32>
    %64 = tpu.matmul %61, %63, %cst_25 {dimension_numbers = #tpu.dot_dimension_numbers<[1], [0], [0], [1], [0, 0, 1, 1], [], []>} : vector<64x16xbf16>, vector<16x16xbf16>, vector<64x16xf32> -> vector<64x16xf32>
    %65 = arith.addf %60, %64 : vector<64x16xf32>
    %66 = vector.extract_strided_slice %47 {offsets = [8, 0], sizes = [64, 16], strides = [1, 1]} : vector<80x16xbf16> to vector<64x16xbf16>
    %c3 = arith.constant 3 : index
    %c0_26 = arith.constant 0 : index
    %c0_27 = arith.constant 0 : index
    %67 = vector.load %arg4[%c3, %c0_26, %c0_27] : memref<9x16x16xbf16, #tpu.memory_space<vmem>>, vector<1x16x16xbf16>
    %68 = vector.shape_cast %67 : vector<1x16x16xbf16> to vector<16x16xbf16>
    %cst_28 = arith.constant dense<0.000000e+00> : vector<64x16xf32>
    %69 = tpu.matmul %66, %68, %cst_28 {dimension_numbers = #tpu.dot_dimension_numbers<[1], [0], [0], [1], [0, 0, 1, 1], [], []>} : vector<64x16xbf16>, vector<16x16xbf16>, vector<64x16xf32> -> vector<64x16xf32>
    %70 = arith.addf %65, %69 : vector<64x16xf32>
    %71 = vector.extract_strided_slice %48 {offsets = [8, 0], sizes = [64, 16], strides = [1, 1]} : vector<80x16xbf16> to vector<64x16xbf16>
    %c4 = arith.constant 4 : index
    %c0_29 = arith.constant 0 : index
    %c0_30 = arith.constant 0 : index
    %72 = vector.load %arg4[%c4, %c0_29, %c0_30] : memref<9x16x16xbf16, #tpu.memory_space<vmem>>, vector<1x16x16xbf16>
    %73 = vector.shape_cast %72 : vector<1x16x16xbf16> to vector<16x16xbf16>
    %cst_31 = arith.constant dense<0.000000e+00> : vector<64x16xf32>
    %74 = tpu.matmul %71, %73, %cst_31 {dimension_numbers = #tpu.dot_dimension_numbers<[1], [0], [0], [1], [0, 0, 1, 1], [], []>} : vector<64x16xbf16>, vector<16x16xbf16>, vector<64x16xf32> -> vector<64x16xf32>
    %75 = arith.addf %70, %74 : vector<64x16xf32>
    %76 = vector.extract_strided_slice %49 {offsets = [8, 0], sizes = [64, 16], strides = [1, 1]} : vector<80x16xbf16> to vector<64x16xbf16>
    %c5 = arith.constant 5 : index
    %c0_32 = arith.constant 0 : index
    %c0_33 = arith.constant 0 : index
    %77 = vector.load %arg4[%c5, %c0_32, %c0_33] : memref<9x16x16xbf16, #tpu.memory_space<vmem>>, vector<1x16x16xbf16>
    %78 = vector.shape_cast %77 : vector<1x16x16xbf16> to vector<16x16xbf16>
    %cst_34 = arith.constant dense<0.000000e+00> : vector<64x16xf32>
    %79 = tpu.matmul %76, %78, %cst_34 {dimension_numbers = #tpu.dot_dimension_numbers<[1], [0], [0], [1], [0, 0, 1, 1], [], []>} : vector<64x16xbf16>, vector<16x16xbf16>, vector<64x16xf32> -> vector<64x16xf32>
    %80 = arith.addf %75, %79 : vector<64x16xf32>
    %81 = vector.extract_strided_slice %47 {offsets = [16, 0], sizes = [64, 16], strides = [1, 1]} : vector<80x16xbf16> to vector<64x16xbf16>
    %c6 = arith.constant 6 : index
    %c0_35 = arith.constant 0 : index
    %c0_36 = arith.constant 0 : index
    %82 = vector.load %arg4[%c6, %c0_35, %c0_36] : memref<9x16x16xbf16, #tpu.memory_space<vmem>>, vector<1x16x16xbf16>
    %83 = vector.shape_cast %82 : vector<1x16x16xbf16> to vector<16x16xbf16>
    %cst_37 = arith.constant dense<0.000000e+00> : vector<64x16xf32>
    %84 = tpu.matmul %81, %83, %cst_37 {dimension_numbers = #tpu.dot_dimension_numbers<[1], [0], [0], [1], [0, 0, 1, 1], [], []>} : vector<64x16xbf16>, vector<16x16xbf16>, vector<64x16xf32> -> vector<64x16xf32>
    %85 = arith.addf %80, %84 : vector<64x16xf32>
    %86 = vector.extract_strided_slice %48 {offsets = [16, 0], sizes = [64, 16], strides = [1, 1]} : vector<80x16xbf16> to vector<64x16xbf16>
    %c7 = arith.constant 7 : index
    %c0_38 = arith.constant 0 : index
    %c0_39 = arith.constant 0 : index
    %87 = vector.load %arg4[%c7, %c0_38, %c0_39] : memref<9x16x16xbf16, #tpu.memory_space<vmem>>, vector<1x16x16xbf16>
    %88 = vector.shape_cast %87 : vector<1x16x16xbf16> to vector<16x16xbf16>
    %cst_40 = arith.constant dense<0.000000e+00> : vector<64x16xf32>
    %89 = tpu.matmul %86, %88, %cst_40 {dimension_numbers = #tpu.dot_dimension_numbers<[1], [0], [0], [1], [0, 0, 1, 1], [], []>} : vector<64x16xbf16>, vector<16x16xbf16>, vector<64x16xf32> -> vector<64x16xf32>
    %90 = arith.addf %85, %89 : vector<64x16xf32>
    %91 = vector.extract_strided_slice %49 {offsets = [16, 0], sizes = [64, 16], strides = [1, 1]} : vector<80x16xbf16> to vector<64x16xbf16>
    %c8 = arith.constant 8 : index
    %c0_41 = arith.constant 0 : index
    %c0_42 = arith.constant 0 : index
    %92 = vector.load %arg4[%c8, %c0_41, %c0_42] : memref<9x16x16xbf16, #tpu.memory_space<vmem>>, vector<1x16x16xbf16>
    %93 = vector.shape_cast %92 : vector<1x16x16xbf16> to vector<16x16xbf16>
    %cst_43 = arith.constant dense<0.000000e+00> : vector<64x16xf32>
    %94 = tpu.matmul %91, %93, %cst_43 {dimension_numbers = #tpu.dot_dimension_numbers<[1], [0], [0], [1], [0, 0, 1, 1], [], []>} : vector<64x16xbf16>, vector<16x16xbf16>, vector<64x16xf32> -> vector<64x16xf32>
    %95 = arith.addf %90, %94 : vector<64x16xf32>
    %c0_44 = arith.constant 0 : index
    %c0_45 = arith.constant 0 : index
    %96 = vector.load %arg5[%c0_44, %c0_45] : memref<1x16xf32, #tpu.memory_space<vmem>>, vector<1x16xf32>
    %97 = vector.broadcast %96 : vector<1x16xf32> to vector<64x16xf32>
    %98 = arith.addf %95, %97 : vector<64x16xf32>
    %cst_46 = arith.constant 0.000000e+00 : f32
    %99 = vector.broadcast %cst_46 : f32 to vector<64x16xf32>
    %100 = arith.maximumf %98, %99 : vector<64x16xf32>
    %101 = arith.truncf %100 : vector<64x16xf32> to vector<64x16xbf16>
    %c0_47 = arith.constant 0 : index
    %c0_48 = arith.constant 0 : index
    %102 = vector.load %arg6[%c0_47, %c0_48] : memref<64x16xbf16, #tpu.memory_space<vmem>>, vector<64x16xbf16>
    %cst_49 = arith.constant dense<0.000000e+00> : vector<64x64xf32>
    %103 = tpu.matmul %102, %101, %cst_49 {dimension_numbers = #tpu.dot_dimension_numbers<[1], [1], [0], [0], [0, 0, 1, 0], [], []>} : vector<64x16xbf16>, vector<64x16xbf16>, vector<64x64xf32> -> vector<64x64xf32>
    %c0_50 = arith.constant 0 : index
    %c0_51 = arith.constant 0 : index
    %104 = vector.load %arg7[%c0_50, %c0_51] : memref<64x1xf32, #tpu.memory_space<vmem>>, vector<64x1xf32>
    %105 = vector.broadcast %104 : vector<64x1xf32> to vector<64x64xf32>
    %106 = arith.addf %103, %105 : vector<64x64xf32>
    %cst_52 = arith.constant dense<0.000000e+00> : vector<64xf32>
    %107 = vector.multi_reduction <add>, %106, %cst_52 [1] : vector<64x64xf32> to vector<64xf32>
    %108 = vector.shape_cast %107 : vector<64xf32> to vector<64x1xf32>
    %109 = vector.shape_cast %108 : vector<64x1xf32> to vector<1x64x1xf32>
    %c0_53 = arith.constant 0 : index
    %c0_54 = arith.constant 0 : index
    %c0_55 = arith.constant 0 : index
    %110 = vector.load %arg9[%c0_53, %c0_54, %c0_55] : memref<1x64x1xf32, #tpu.memory_space<vmem>>, vector<1x64x1xf32>
    tpu.vector_store %arg9[%c0_53, %c0_54, %c0_55], %109 {strides = array<i32>} : memref<1x64x1xf32, #tpu.memory_space<vmem>>, vector<1x64x1xf32>,
    %111 = vector.shape_cast %106 : vector<64x64xf32> to vector<1x64x64xf32>
    %112 = arith.truncf %111 : vector<1x64x64xf32> to vector<1x64x64xbf16>
    %c0_56 = arith.constant 0 : index
    %c0_57 = arith.constant 0 : index
    %c0_58 = arith.constant 0 : index
    %113 = vector.load %arg8[%c0_56, %c0_57, %c0_58] : memref<1x64x64xbf16, #tpu.memory_space<vmem>>, vector<1x64x64xbf16>
    tpu.vector_store %arg8[%c0_56, %c0_57, %c0_58], %112 {strides = array<i32>} : memref<1x64x64xbf16, #tpu.memory_space<vmem>>, vector<1x64x64xbf16>,
    return
  }
  func.func @transform_0(%arg0: i32) -> (i32, i32, i32) {
    %c0_i32 = arith.constant 0 : i32
    %c0_i32_0 = arith.constant 0 : i32
    %c0_i32_1 = arith.constant 0 : i32
    return %arg0, %c0_i32, %c0_i32_0 : i32, i32, i32
  }
  func.func @transform_1(%arg0: i32) -> (i32, i32) {
    %c0_i32 = arith.constant 0 : i32
    %c0_i32_0 = arith.constant 0 : i32
    %c0_i32_1 = arith.constant 0 : i32
    return %c0_i32, %c0_i32_0 : i32, i32
  }
  func.func @transform_2(%arg0: i32) -> (i32, i32) {
    %c0_i32 = arith.constant 0 : i32
    %c0_i32_0 = arith.constant 0 : i32
    %c0_i32_1 = arith.constant 0 : i32
    return %c0_i32, %c0_i32_0 : i32, i32
  }
  func.func @transform_3(%arg0: i32) -> (i32, i32, i32) {
    %c0_i32 = arith.constant 0 : i32
    %c0_i32_0 = arith.constant 0 : i32
    %c0_i32_1 = arith.constant 0 : i32
    %c0_i32_2 = arith.constant 0 : i32
    return %c0_i32, %c0_i32_0, %c0_i32_1 : i32, i32, i32
  }
  func.func @transform_4(%arg0: i32) -> (i32, i32) {
    %c0_i32 = arith.constant 0 : i32
    %c0_i32_0 = arith.constant 0 : i32
    %c0_i32_1 = arith.constant 0 : i32
    return %c0_i32, %c0_i32_0 : i32, i32
  }
  func.func @transform_5(%arg0: i32) -> (i32, i32) {
    %c0_i32 = arith.constant 0 : i32
    %c0_i32_0 = arith.constant 0 : i32
    %c0_i32_1 = arith.constant 0 : i32
    return %c0_i32, %c0_i32_0 : i32, i32
  }
  func.func @transform_6(%arg0: i32) -> (i32, i32) {
    %c0_i32 = arith.constant 0 : i32
    %c0_i32_0 = arith.constant 0 : i32
    %c0_i32_1 = arith.constant 0 : i32
    return %c0_i32, %c0_i32_0 : i32, i32
  }
  func.func @transform_7(%arg0: i32) -> (i32, i32, i32) {
    %c0_i32 = arith.constant 0 : i32
    %c0_i32_0 = arith.constant 0 : i32
    %c0_i32_1 = arith.constant 0 : i32
    return %arg0, %c0_i32, %c0_i32_0 : i32, i32, i32
  }
  func.func @transform_8(%arg0: i32) -> (i32, i32, i32) {
    %c0_i32 = arith.constant 0 : i32
    %c0_i32_0 = arith.constant 0 : i32
    %c0_i32_1 = arith.constant 0 : i32
    return %arg0, %c0_i32, %c0_i32_0 : i32, i32, i32
  }
}

</mosaic_0001>

<bundles_post_ra>
// kernel: _lambda_.3
= control target key start
LH: loop header
LB: loop body
LE: loop exit
PB: predicated region body
PF: predicated region fallthrough
CT: control target
= control target key end

     0   :  { %s1110_s24 = smov 0   ;;  %s1112_s25 = smov 0   ;;  %s1255_s0 = inlined_call_operand.vmem [shape: f32[2,64,1], index: 0, kind: input, shape index: {}]   ;;  %s1256_s1 = inlined_call_operand.vmem [shape: f32[4,64], index: 1, kind: input, shape index: {}]   ;;  %s1257_s2 = inlined_call_operand.vmem [shape: f32[4,1], index: 2, kind: input, shape index: {}]   ;;  %s1258_s3 = inlined_call_operand.vmem [shape: f32[64,4], index: 3, kind: input, shape index: {}]   ;;  %s1259_s4 = inlined_call_operand.vmem [shape: f32[64,1], index: 4, kind: input, shape index: {}]   ;;  %s1260_s5 = inlined_call_operand.vmem [shape: bf16[2,64,64], index: 5, kind: input, shape index: {}]   ;;  %s1261_s6 = inlined_call_operand.vmem [shape: f32[2,64,64], index: 6, kind: input, shape index: {}]   ;;  %s1262_s7 = inlined_call_operand.vmem [shape: f32[2,64,64], index: 7, kind: output, shape index: {}]  }
   0x1   :  { %s1114_s26 = smov 0  }
   0x2 LB: > { %s29_s27 = sadd.s32 1, %s1060_s25  ;;  %p865_p0 = scmp.ge.s32.totalorder %s1064_s26, 1  ;;  %s1064_s26 = sphi %s1114_s26, %s17_s26   ;;  %s1060_s25 = sphi %s1112_s25, %s1264_s25   ;;  %s1056_s24 = sphi %s1110_s24, %s1263_s24  }
   0x3   : > { %p31_p1 = scmp.ge.s32.totalorder %s29_s27, 2  ;;  %p281_p2 = scmp.lt.s32.totalorder %s1064_s26, 3 }
   0x5   : > { %s1266_s27 = smov (%p31_p1, %s29_s27), 0  ;;  %p282_p3 = pnand %p865_p0, %p281_p2 }
   0x6   : > { %p332_p4 = scmp.lt.s32.totalorder (!%p282_p3), %s1056_s24, 1  ;;  %v1066_v0 = vmov (!%p282_p3), 0.0|0.0   ;;  %vm1067_vm0 = vmmov (!%p282_p3), 0   ;;  %v1068_v1 = vmov (!%p282_p3), 0.0   ;;  %v377_v22 = vld [vmem:[%s1256_s1] sm:$0xf] (!%p282_p3) }
   0x7   : > { %285 = sbr.rel (%p282_p3) target bundleno = 646 (0x286), region = 48  ;;  %968 = vmatprep.subr.bf16.mxu0 (!%p282_p3), %v1066_v0  ;;  %951 = vmatprep.mubr.msk.f32.mxu0 (!%p282_p3), %vm1067_vm0, %v1068_v1  ;;  %vm379_vm1 = vcmask (!%p282_p3), 523264   ;;  %v454_v23 = vld [vmem:[%s1258_s3] sm:$0xff] (!%p282_p3)  ;;  %vm470_vm2 = vcmask (!%p282_p3), 31744   ;;  %vm495_vm3 = vcmask (!%p282_p3), 1043456   ;;  %v455_v29 = vld [vmem:[%s1258_s3 + $0x8] sm:$0xff] (!%p282_p3) }
   0x8   : > { %956 = vmatprep.mubr.msk.f32.mxu1 (!%p282_p3), %vm470_vm2, %v454_v23  ;;  %v378_v24 = vld [vmem:[%s1257_s2] sm:$0xf] (!%p282_p3)  ;;  %v456_v30 = vld [vmem:[%s1258_s3 + $0x10] sm:$0xff] (!%p282_p3)  ;;  %v457_v31 = vld [vmem:[%s1258_s3 + $0x18] sm:$0xff] (!%p282_p3)  ;;  %v1069_v36 = vmov (!%p282_p3), 0  }
   0x9   : > { %v458_v32 = vld [vmem:[%s1258_s3 + $0x20] sm:$0xff] (!%p282_p3)  ;;  %v459_v33 = vld [vmem:[%s1258_s3 + $0x28] sm:$0xff] (!%p282_p3)  ;;  %v460_v34 = vld [vmem:[%s1258_s3 + $0x30] sm:$0xff] (!%p282_p3)  ;;  %1008 = vset.pattern.permute.xlu0 (!%p282_p3), %v1069_v36  ;;  %1009 = vset.pattern.permute.xlu1 (!%p282_p3), %v1069_v36 }
   0xa   : > { %v461_v35 = vld [vmem:[%s1258_s3 + $0x38] sm:$0xff] (!%p282_p3)  ;;  %v463_v37 = vld [vmem:[%s1259_s4 + $0x8] sm:$0xff] (!%p282_p3)  ;;  %v462_v38 = vld [vmem:[%s1259_s4] sm:$0xff] (!%p282_p3) }
   0xb   : > { %v465_v43 = vld [vmem:[%s1259_s4 + $0x18] sm:$0xff] (!%p282_p3)  ;;  %v464_v45 = vld [vmem:[%s1259_s4 + $0x10] sm:$0xff] (!%p282_p3)  ;;  %v467_v51 = vld [vmem:[%s1259_s4 + $0x28] sm:$0xff] (!%p282_p3) }
   0xc   : > { %v466_v53 = vld [vmem:[%s1259_s4 + $0x20] sm:$0xff] (!%p282_p3)  ;;  %v469_v59 = vld [vmem:[%s1259_s4 + $0x38] sm:$0xff] (!%p282_p3)  ;;  %v468_v61 = vld [vmem:[%s1259_s4 + $0x30] sm:$0xff] (!%p282_p3) }
   0xe   : > { %s1268_s24 = smov (!%p332_p4, %s1056_s24), 1 }
   0xf   : > { %s1131_s28 = sshll.u32 %s1268_s24, 6  ;;  %s895_s9 = sshll.u32 %s1268_s24, 5 }
  0x10   : > { %s336_s8 = scalar_lea.vmem %s1255_s0, %s1131_s28  ;;  %s1204_s12 = scalar_lea.vmem %s1260_s5, %s895_s9 }
  0x11   : > { %v361_v2 = vld [vmem:[%s336_s8] sm:$0xff]  ;;  %v362_v3 = vld [vmem:[%s336_s8 + $0x8] sm:$0xff]  ;;  %v363_v4 = vld [vmem:[%s336_s8 + $0x10] sm:$0xff]  ;;  %s1211_s15 = scalar_lea.vmem %s1261_s6, %s1131_s28  ;;  %s1220_s17 = scalar_lea.vmem %s1262_s7, %s1131_s28 }
  0x12   : > { %v369_v5 = vmul.f32 0.015625, %v361_v2  ;;  %v370_v6 = vmul.f32 0.015625, %v362_v3  ;;  %v364_v7 = vld [vmem:[%s336_s8 + $0x18] sm:$0xff]  ;;  %v371_v8 = vmul.f32 0.015625, %v363_v4  ;;  %v365_v10 = vld [vmem:[%s336_s8 + $0x20] sm:$0xff]  ;;  %v366_v11 = vld [vmem:[%s336_s8 + $0x28] sm:$0xff] }
  0x13   : > { %v372_v9 = vmul.f32 0.015625, %v364_v7  ;;  %v373_v14 = vmul.f32 0.015625, %v365_v10  ;;  %v374_v15 = vmul.f32 0.015625, %v366_v11  ;;  %v367_v16 = vld [vmem:[%s336_s8 + $0x30] sm:$0xff]  ;;  %v368_v17 = vld [vmem:[%s336_s8 + $0x38] sm:$0xff] }
  0x14   : > { %v969_v12 = vpack.c.bf16 %v370_v6, %v369_v5  ;;  %v375_v19 = vmul.f32 0.015625, %v367_v16  ;;  %v376_v20 = vmul.f32 0.015625, %v368_v17 }
  0x15   : > { %v972_v13 = vpack.c.bf16 %v372_v9, %v371_v8  ;;  %v975_v18 = vpack.c.bf16 %v374_v15, %v373_v14 }
  0x16   : > { %970 = vmatpush3.bf16.msra.mxu0 %v969_v12  ;;  %v978_v21 = vpack.c.bf16 %v376_v20, %v375_v19 }
  0x17   : > { %971 = vmatprep.subr.bf16.mxu0 %v1066_v0 }
  0x1a   : > { %973 = vmatpush3.bf16.msra.mxu0 %v972_v13 }
  0x1b   : > { %974 = vmatprep.subr.bf16.mxu0 %v1066_v0 }
  0x1e   : > { %976 = vmatpush3.bf16.msra.mxu0 %v975_v18 }
  0x1f   : > { %977 = vmatprep.subr.bf16.mxu0 %v1066_v0 }
  0x22   : > { %979 = vmatpush3.bf16.msra.mxu0 %v978_v21 }
  0x25   : > { %952 = vmatmul.mubr.msk.f32.vlgmr.msra.gmra.mrb[0].mxu0 %vm379_vm1, %v377_v22 }
  0xf8   : > { %v449_v25 = vpop.f32.mrb[0].mxu0 }
  0xf9   : > { %v450_v26 = vadd.f32 %v449_v25, %v378_v24  ;;  %v953_v27 = vpop.f32.mrb[1].mxu0 }
  0xfb   : > { %v453_v28 = vmax.f32 %v450_v26, 0.0 }
  0xfd   : > { %954 = vmatprep.subr.msk.mxu1 %vm495_vm3, %v453_v28 }
  0xfe   : > { %955 = vmatpush3.msk.msra.mxu1 %vm495_vm3, %v453_v28 }
  0xff   : > { %957 = vmatmul.mubr.msk.f32.vlgmr.msra.gmra.mrb[0].mxu1 %vm470_vm2, %v455_v29  ;;  %v899_v29 = vld [vmem:[%s1204_s12] sm:$0xff]  }
 0x100   : > { %959 = vmatprep.mubr.msk.f32.mxu1 %vm470_vm2, %v456_v30  ;;  %v901_v30 = vunpack.c.h.bf16 %v899_v29  ;;  %v900_v36 = vunpack.c.l.bf16 %v899_v29 }
 0x103   : > { %960 = vmatmul.mubr.msk.f32.gmra.mrb[2].mxu1 %vm470_vm2, %v457_v31  ;;  %v914_v31 = vld [vmem:[%s1204_s12 + $0x8] sm:$0xff]  }
 0x104   : > { %962 = vmatprep.mubr.msk.f32.mxu1 %vm470_vm2, %v458_v32  ;;  %v717_v32 = vld [vmem:[%s1211_s15 + $0x8] sm:$0xff] }
 0x107   : > { %963 = vmatmul.mubr.msk.f32.gmra.mrb[4].mxu1 %vm470_vm2, %v459_v33 }
 0x108   : > { %965 = vmatprep.mubr.msk.f32.mxu1 %vm470_vm2, %v460_v34 }
 0x10b   : > { %966 = vmatmul.mubr.msk.f32.gmra.mrb[6].mxu1 %vm470_vm2, %v461_v35  ;;  %v905_v35 = vunpack.c.h.bf16 %v914_v31 }
 0x1d2   : > { %v958_v39 = vpop.f32.mrb[0].mxu1 }
 0x1d3   : > { %v571_v40 = vadd.f32 %v958_v39, %v463_v37  ;;  %v565_v41 = vpop.f32.mrb[1].mxu1  ;;  %v719_v39 = vld [vmem:[%s1211_s15 + $0x18] sm:$0xff] }
 0x1d4   : > { %v566_v42 = vadd.f32 %v565_v41, %v462_v38  ;;  %v915_v38 = vld [vmem:[%s1204_s12 + $0x10] sm:$0xff]   ;;  %v716_v41 = vld [vmem:[%s1211_s15] sm:$0xff] }
 0x1d5   : > { %v885_v44 = vmul.f32 -1.442695, %v571_v40 }
 0x1d6   : > { %v884_v46 = vmul.f32 -1.442695, %v566_v42  ;;  %v961_v47 = vpop.f32.mrb[2].mxu1 }
 0x1d7   : > { %1010 = vpow2.f32 %v885_v44  ;;  %v581_v48 = vadd.f32 %v961_v47, %v465_v43  ;;  %v575_v49 = vpop.f32.mrb[3].mxu1  ;;  %v908_v47 = vunpack.c.l.bf16 %v915_v38 }
 0x1d8   : > { %1012 = vpow2.f32 %v884_v46  ;;  %v576_v50 = vadd.f32 %v575_v49, %v464_v45  ;;  %v904_v46 = vunpack.c.l.bf16 %v914_v31 }
 0x1d9   : > { %v887_v52 = vmul.f32 -1.442695, %v581_v48 }
 0x1da   : > { %v886_v54 = vmul.f32 -1.442695, %v576_v50  ;;  %v964_v55 = vpop.f32.mrb[4].mxu1  ;;  %v718_v50 = vld [vmem:[%s1211_s15 + $0x10] sm:$0xff] }
 0x1db   : > { %1014 = vpow2.f32 %v887_v52  ;;  %v591_v56 = vadd.f32 %v964_v55, %v467_v51  ;;  %v585_v57 = vpop.f32.mrb[5].mxu1  ;;  %v720_v55 = vld [vmem:[%s1211_s15 + $0x20] sm:$0xff] }
 0x1dc   : > { %1016 = vpow2.f32 %v886_v54  ;;  %v586_v58 = vadd.f32 %v585_v57, %v466_v53  ;;  %v909_v57 = vunpack.c.h.bf16 %v915_v38 }
 0x1dd   : > { %v889_v60 = vmul.f32 -1.442695, %v591_v56 }
 0x1de   : > { %v888_v62 = vmul.f32 -1.442695, %v586_v58  ;;  %v967_v63 = vpop.f32.mrb[6].mxu1  ;;  %v916_v58 = vld [vmem:[%s1204_s12 + $0x18] sm:$0xff]  }
 0x1df   : > { %1018 = vpow2.f32 %v889_v60  ;;  %v601_v0 = vadd.f32 %v967_v63, %v469_v59  ;;  %v595_v1 = vpop.f32.mrb[7].mxu1 }
 0x1e0   : > { %1020 = vpow2.f32 %v888_v62  ;;  %v596_v2 = vadd.f32 %v595_v1, %v468_v61  ;;  %v721_v62 = vld [vmem:[%s1211_s15 + $0x28] sm:$0xff] }
 0x1e1   : > { %v1011_v3 = vpop.eup %1010  ;;  %v891_v4 = vmul.f32 -1.442695, %v601_v0  ;;  %v912_v0 = vunpack.c.l.bf16 %v916_v58 }
 0x1e2   : > { %v1013_v5 = vpop.eup %1012  ;;  %v629_v6 = vadd.f32 1.0, %v1011_v3  ;;  %v890_v7 = vmul.f32 -1.442695, %v596_v2  ;;  %v913_v3 = vunpack.c.h.bf16 %v916_v58 }
 0x1e3   : > { %v628_v8 = vadd.f32 1.0, %v1013_v5  ;;  %1022 = vpow2.f32 %v891_v4 }
 0x1e4   : > { %1024 = vrcp.f32 %v629_v6  ;;  %v722_v6 = vld [vmem:[%s1211_s15 + $0x30] sm:$0xff] }
 0x1e5   : > { %v1015_v9 = vpop.eup %1014  ;;  %1026 = vpow2.f32 %v890_v7 }
 0x1e6   : > { %v1017_v10 = vpop.eup %1016  ;;  %v631_v11 = vadd.f32 1.0, %v1015_v9  ;;  %1028 = vrcp.f32 %v628_v8  ;;  %v723_v9 = vld [vmem:[%s1211_s15 + $0x38] sm:$0xff] }
 0x1e7   : > { %v630_v12 = vadd.f32 1.0, %v1017_v10 }
 0x1e8   : > { %1030 = vrcp.f32 %v631_v11 }
 0x1e9   : > { %v1019_v13 = vpop.eup %1018  ;;  %1032 = vrcp.f32 %v630_v12 }
 0x1ea   : > { %v1021_v14 = vpop.eup %1020  ;;  %v633_v15 = vadd.f32 1.0, %v1019_v13 }
 0x1eb   : > { %v632_v16 = vadd.f32 1.0, %v1021_v14 }
 0x1ed   : > { %v1023_v17 = vpop.eup %1022  ;;  %1034 = vrcp.f32 %v632_v16 }
 0x1ee   : > { %v1025_v18 = vpop.eup %1024  ;;  %1036 = vrcp.f32 %v633_v15  ;;  %v635_v19 = vadd.f32 1.0, %v1023_v17 }
 0x1ef   : > { %675 = vperm.xlu0 %1008, %v1025_v18   ;;  %v1027_v20 = vpop.eup %1026 }
 0x1f0   : > { %v1029_v21 = vpop.eup %1028  ;;  %v634_v22 = vadd.f32 1.0, %v1027_v20  ;;  %1038 = vrcp.f32 %v635_v19 }
 0x1f2   : > { %v1031_v23 = vpop.eup %1030  ;;  %1040 = vrcp.f32 %v634_v22 }
 0x1f3   : > { %685 = vperm.xlu1 %1009, %v1031_v23   ;;  %670 = vperm.xlu0 %1008, %v1029_v21   ;;  %v1033_v24 = vpop.eup %1032 }
 0x1f7   : > { %v1035_v25 = vpop.eup %1034  ;;  %680 = vperm.xlu1 %1009, %v1033_v24  }
 0x1f8   : > { %v1037_v26 = vpop.eup %1036  ;;  %690 = vperm.xlu0 %1008, %v1035_v25  }
 0x1fa   : > { %v1039_v27 = vpop.eup %1038 }
 0x1fb   : > { %695 = vperm.xlu1 %1009, %v1037_v26  }
 0x1fc   : > { %v1041_v28 = vpop.eup %1040 }
 0x1fd   : > { %700 = vperm.xlu0 %1008, %v1041_v28  }
 0x1ff   : > { %705 = vperm.xlu1 %1009, %v1039_v27  }
 0x26e   : > { %v676_v33 = vpop.permute.xlu0 %675 }
 0x26f   : > { %v709_v34 = vmul.f32 %v901_v30, %v676_v33 }
 0x271   : > { %v725_v37 = vadd.f32 %v717_v32, %v709_v34 }
 0x272   : > { %v686_v40 = vpop.permute.xlu1 %685  ;;  %v671_v42 = vpop.permute.xlu0 %670 }
 0x273   : > { %v733_v43 = vmax.f32 %v725_v37, 0.0  ;;  %v711_v44 = vmul.f32 %v905_v35, %v686_v40  ;;  %v708_v45 = vmul.f32 %v900_v36, %v671_v42 }
 0x275   : > { %741 = vst.msk [vmem:[%s1220_s17 + $0x8] sm:$0xff] %vm379_vm1, %v733_v43  ;;  %v727_v48 = vadd.f32 %v719_v39, %v711_v44  ;;  %v724_v49 = vadd.f32 %v716_v41, %v708_v45 }
 0x276   : > { %v681_v51 = vpop.permute.xlu1 %680 }
 0x277   : > { %v735_v52 = vmax.f32 %v727_v48, 0.0  ;;  %v732_v53 = vmax.f32 %v724_v49, 0.0  ;;  %v710_v54 = vmul.f32 %v904_v46, %v681_v51  ;;  %v691_v56 = vpop.permute.xlu0 %690 }
 0x278   : > { %v712_v59 = vmul.f32 %v908_v47, %v691_v56 }
 0x279   : > { %743 = vst.msk [vmem:[%s1220_s17 + $0x18] sm:$0xff] %vm379_vm1, %v735_v52  ;;  %740 = vst.msk [vmem:[%s1220_s17] sm:$0xff] %vm379_vm1, %v732_v53  ;;  %v726_v60 = vadd.f32 %v718_v50, %v710_v54 }
 0x27a   : > { %v728_v61 = vadd.f32 %v720_v55, %v712_v59  ;;  %v696_v63 = vpop.permute.xlu1 %695 }
 0x27b   : > { %v734_v1 = vmax.f32 %v726_v60, 0.0  ;;  %v713_v2 = vmul.f32 %v909_v57, %v696_v63 }
 0x27c   : > { %v736_v4 = vmax.f32 %v728_v61, 0.0  ;;  %v701_v7 = vpop.permute.xlu0 %700 }
 0x27d   : > { %742 = vst.msk [vmem:[%s1220_s17 + $0x10] sm:$0xff] %vm379_vm1, %v734_v1  ;;  %v729_v5 = vadd.f32 %v721_v62, %v713_v2  ;;  %v714_v8 = vmul.f32 %v912_v0, %v701_v7 }
 0x27e   : > { %744 = vst.msk [vmem:[%s1220_s17 + $0x20] sm:$0xff] %vm379_vm1, %v736_v4  ;;  %v706_v10 = vpop.permute.xlu1 %705 }
 0x27f   : > { %v737_v11 = vmax.f32 %v729_v5, 0.0  ;;  %v715_v12 = vmul.f32 %v913_v3, %v706_v10  ;;  %v730_v13 = vadd.f32 %v722_v6, %v714_v8 }
 0x281   : > { %745 = vst.msk [vmem:[%s1220_s17 + $0x28] sm:$0xff] %vm379_vm1, %v737_v11  ;;  %v731_v14 = vadd.f32 %v723_v9, %v715_v12  ;;  %v738_v15 = vmax.f32 %v730_v13, 0.0 }
 0x283   : > { %v739_v16 = vmax.f32 %v731_v14, 0.0  ;;  %746 = vst.msk [vmem:[%s1220_s17 + $0x30] sm:$0xff] %vm379_vm1, %v738_v15 }
 0x285   : > { %747 = vst.msk [vmem:[%s1220_s17 + $0x38] sm:$0xff] %vm379_vm1, %v739_v16 }
 0x286 PF: > { %s17_s26 = sadd.s32 1, %s1064_s26   ;;  %s1263_s24 = smov %s1060_s25 }
 0x287   : > { %p14_p5 = scmp.ge.s32.totalorder %s17_s26, 4   ;;  %s1264_s25 = smov %s1266_s27 }
 0x289   :  { %16 = sbr.rel (!%p14_p5) target bundleno = 2 (0x2), region = 84 }

// kernel: _lambda_.2
= control target key start
LH: loop header
LB: loop body
LE: loop exit
PB: predicated region body
PF: predicated region fallthrough
CT: control target
= control target key end

     0   :  { %s2390_s27 = smov 0   ;;  %s2948_s0 = inlined_call_operand.vmem [shape: f32[2,64,64], index: 0, kind: input, shape index: {}]   ;;  %s2949_s1 = inlined_call_operand.vmem [shape: bf16[16,64], index: 1, kind: input, shape index: {}]   ;;  %s2950_s2 = inlined_call_operand.vmem [shape: f32[16,1], index: 2, kind: input, shape index: {}]   ;;  %s2951_s3 = inlined_call_operand.vmem [shape: bf16[9,16,16], index: 3, kind: input, shape index: {}]   ;;  %s2952_s4 = inlined_call_operand.vmem [shape: f32[1,16], index: 4, kind: input, shape index: {}]   ;;  %s2953_s5 = inlined_call_operand.vmem [shape: bf16[64,16], index: 5, kind: input, shape index: {}]   ;;  %s2954_s6 = inlined_call_operand.vmem [shape: f32[64,1], index: 6, kind: input, shape index: {}]   ;;  %s2955_s7 = inlined_call_operand.vmem [shape: bf16[2,64,64], index: 7, kind: output, shape index: {0}]   ;;  %s2956_s8 = inlined_call_operand.vmem [shape: f32[2,64,1], index: 8, kind: output, shape index: {1}]  }
   0x1 LB: > { %s1951_s28 = sadd.s32 4294967295, %s2340_s27   ;;  %p1955_p0 = scmp.ge.s32.totalorder %s2340_s27, 1  ;;  %s2340_s27 = sphi %s2390_s27, %s19_s27  }
   0x2   : > { %p265_p1 = scmp.lt.s32.totalorder %s2340_s27, 3 }
   0x4   : > { %p266_p2 = pnand %p1955_p0, %p265_p1 }
   0x5   : > { %p304_p3 = scmp.lt.s32.totalorder (!%p266_p2), %s1951_s28, 1  ;;  %v2342_v0 = vmov (!%p266_p2), 0.0   ;;  %vm2343_vm0 = vmmov (!%p266_p2), 0   ;;  %v336_v1 = vld [vmem:[%s2950_s2] sm:$0xff] (!%p266_p2)  ;;  %v2344_v2 = vmov (!%p266_p2), 0   ;;  %v337_v3 = vld [vmem:[%s2950_s2 + $0x8] sm:$0xff] (!%p266_p2)  ;;  %v436_v38 = vlaneseq (!%p266_p2) }
   0x6   : > { %269 = sbr.rel (%p266_p2) target bundleno = 1134 (0x46e), region = 48  ;;  %2121 = vmatprep.subr.bf16.mxu0 (!%p266_p2), %v2342_v0  ;;  %2129 = vmatprep.mubr.msk.bf16.mxu0 (!%p266_p2), %vm2343_vm0, %v2342_v0  ;;  %v1632_v9 = vld [vmem:[%s2954_s6] sm:$0xff] (!%p266_p2)  ;;  %v1634_v13 = vld [vmem:[%s2954_s6 + $0x10] sm:$0xff] (!%p266_p2)  ;;  %v1635_v17 = vld [vmem:[%s2954_s6 + $0x18] sm:$0xff] (!%p266_p2)  ;;  %vm353_vm1 = vcmask (!%p266_p2), 523264   ;;  %vm723_vm9 = vcmask (!%p266_p2), 1043456  }
   0x7   : > { %2318 = vset.pattern.permute.xlu0 (!%p266_p2), %v2344_v2  ;;  %v2320_v19 = vld [vmem:[%s2949_s1] sm:$0xff] (!%p266_p2)   ;;  %v1637_v21 = vld [vmem:[%s2954_s6 + $0x28] sm:$0xff] (!%p266_p2)  ;;  %v1638_v22 = vld [vmem:[%s2954_s6 + $0x30] sm:$0xff] (!%p266_p2)  ;;  %v2457_v39 = vshrl.u32 (!%p266_p2), %v436_v38, 7  ;;  %vm541_vm8 = vsmask.f32 (!%p266_p2), 256 }
   0x8   : > { %340 = vperm.xlu0 (!%p266_p2), %2318, %v336_v1   ;;  %v1636_v20 = vld [vmem:[%s2954_s6 + $0x20] sm:$0xff] (!%p266_p2)  ;;  %v1639_v23 = vld [vmem:[%s2954_s6 + $0x38] sm:$0xff] (!%p266_p2)  ;;  %v2321_v34 = vld [vmem:[%s2951_s3 + $0x8] sm:$0xff] (!%p266_p2)   ;;  %vm577_vm10 = vcmask (!%p266_p2), 1040384   ;;  %vm778_vm11 = vcmask (!%p266_p2), 130048  }
   0x9   : > { %v2322_v35 = vld [vmem:[%s2951_s3 + $0x18] sm:$0xff] (!%p266_p2)   ;;  %v2448_v36 = vld [vmem:[%s2951_s3] sm:$0xff] (!%p266_p2)   ;;  %v2460_v40 = vadd.s32 (!%p266_p2), 8, %v2457_v39  ;;  %v449_v41 = vand.u32 (!%p266_p2), 7, %v2457_v39  ;;  %v2465_v43 = vadd.s32 (!%p266_p2), 16, %v2457_v39  ;;  %v2468_v44 = vadd.s32 (!%p266_p2), 24, %v2457_v39  ;;  %vm2515_vm14 = vmand (!%p266_p2), %vm577_vm10, %vm541_vm8 }
   0xa   : > { %2163 = vmatprep.subr.bf16.mxu1 (!%p266_p2), %v2322_v35  ;;  %v2453_v37 = vld [vmem:[%s2951_s3 + $0x20] sm:$0xff] (!%p266_p2)   ;;  %v2477_v49 = vadd.s32 (!%p266_p2), 32, %v2457_v39  ;;  %v2489_v53 = vadd.s32 (!%p266_p2), 40, %v2457_v39 }
   0xb   : > { %2164 = vmatpush3.bf16.msra.mxu1 (!%p266_p2), %v2322_v35  ;;  %v456_v42 = vand.u32 (!%p266_p2), 7, %v2460_v40  ;;  %vm580_vm2 = vcmp.ne.s32.totalorder (!%p266_p2), %v449_v41, 0  ;;  %v463_v46 = vand.u32 (!%p266_p2), 7, %v2465_v43  ;;  %v470_v47 = vand.u32 (!%p266_p2), 7, %v2468_v44 }
   0xc   : > { %345 = vperm.xlu0 (!%p266_p2), %2318, %v337_v3   ;;  %2173 = vmatprep.subr.bf16.mxu1 (!%p266_p2), %v2453_v37  ;;  %vm604_vm4 = vmpackc.low (!%p266_p2), %vm580_vm2, %vm580_vm2  ;;  %v477_v59 = vand.u32 (!%p266_p2), 7, %v2477_v49 }
   0xd   : > { %s3000_s28 = smov (!%p304_p3, %s1951_s28), 1  ;;  %vm581_vm3 = vcmp.ne.s32.totalorder %v456_v42, 0  ;;  %vm2481_vm6 = vcmp.ne.s32.totalorder %v463_v46, 0  ;;  %v612_v51 = vsel %vm604_vm4, 65537, %v2344_v2  ;;  %vm2493_vm7 = vcmp.ne.s32.totalorder %v470_v47, 0 }
   0xe   : > { %s2052_s9 = sshll.u32 %s3000_s28, 6  ;;  %vm605_vm5 = vmpackc.low %vm581_vm3, %vm581_vm3  ;;  %vm2527_vm15 = vcmp.ne.s32.totalorder %v477_v59, 0  ;;  %s2053_s23 = sshll.u32 %s3000_s28, 5 }
   0xf   : > { %s308_s14 = scalar_lea.vmem %s2948_s0, %s2052_s9  ;;  %v613_v55 = vsel %vm605_vm5, 65537, %v2344_v2  ;;  %vm606_vm12 = vmpackc.low %vm2481_vm6, %vm2481_vm6  ;;  %s2906_s26 = scalar_lea.vmem %s2955_s7, %s2053_s23 }
  0x10   : > { %v322_v4 = vld [vmem:[%s308_s14] sm:$0xff]  ;;  %v323_v5 = vld [vmem:[%s308_s14 + $0x8] sm:$0xff]  ;;  %v324_v6 = vld [vmem:[%s308_s14 + $0x10] sm:$0xff]  ;;  %1642 = vperm.xlu0 %2318, %v1632_v9   ;;  %v1964_v60 = vcombine.low %v612_v51, %v613_v55  ;;  %s318_s10 = scalar_lea.vmem %s2956_s8, %s2052_s9 }
  0x11   : > { %v330_v7 = vpack.c.bf16 %v323_v5, %v322_v4  ;;  %v325_v8 = vld [vmem:[%s308_s14 + $0x18] sm:$0xff]  ;;  %v326_v10 = vld [vmem:[%s308_s14 + $0x20] sm:$0xff]  ;;  %v327_v11 = vld [vmem:[%s308_s14 + $0x28] sm:$0xff]  ;;  %v614_v4 = vsel %vm606_vm12, 65537, %v2344_v2  ;;  %vm2605_vm12 = vcmp.ne.s32.totalorder %v449_v41, 7 }
  0x12   : > { %v331_v12 = vpack.c.bf16 %v325_v8, %v324_v6  ;;  %v328_v14 = vld [vmem:[%s308_s14 + $0x30] sm:$0xff]  ;;  %v329_v15 = vld [vmem:[%s308_s14 + $0x38] sm:$0xff]  ;;  %v332_v16 = vpack.c.bf16 %v327_v11, %v326_v10  ;;  %vm607_vm13 = vmpackc.low %vm2493_vm7, %vm2493_vm7  ;;  %vm632_vm0 = vcmp.ne.s16.totalorder %v1964_v60, 0  ;;  %v2542_v11 = vadd.s32 48, %v2457_v39 }
  0x13   : > { %2122 = vmatpush3.bf16.msra.mxu0 %v330_v7  ;;  %v333_v18 = vpack.c.bf16 %v329_v15, %v328_v14  ;;  %v615_v5 = vsel %vm607_vm13, 65537, %v2344_v2  ;;  %vm608_vm3 = vmpackc.low %vm2527_vm15, %vm2527_vm15 }
  0x14   : > { %2123 = vmatprep.subr.bf16.mxu0 %v2342_v0  ;;  %1652 = vperm.xlu0 %2318, %v1634_v13   ;;  %v1965_v13 = vcombine.low %v614_v4, %v615_v5 }
  0x16   : > { %vm2570_vm5 = vcmp.ne.s16.totalorder %v1965_v13, 0 }
  0x17   : > { %2124 = vmatpush3.bf16.msra.mxu0 %v331_v12  ;;  %v2545_v12 = vadd.s32 56, %v2457_v39 }
  0x18   : > { %2125 = vmatprep.subr.bf16.mxu0 %v2342_v0  ;;  %1657 = vperm.xlu0 %2318, %v1635_v17  }
  0x1b   : > { %2126 = vmatpush3.bf16.msra.mxu0 %v332_v16 }
  0x1c   : > { %2127 = vmatprep.subr.bf16.mxu0 %v2342_v0  ;;  %1662 = vperm.xlu0 %2318, %v1636_v20   ;;  %v484_v0 = vand.u32 7, %v2489_v53 }
  0x1e   : > { %vm2537_vm2 = vcmp.ne.s32.totalorder %v484_v0, 0 }
  0x1f   : > { %2128 = vmatpush3.bf16.msra.mxu0 %v333_v18  ;;  %vm609_vm4 = vmpackc.low %vm2537_vm2, %vm2537_vm2  ;;  %v2558_v18 = vld [vmem:[%s2951_s3 + $0x10] sm:$0xff]  }
  0x20   : > { %1667 = vperm.xlu0 %2318, %v1637_v21   ;;  %2133 = vmatprep.subr.bf16.mxu0 %v2321_v34 }
  0x22   : > { %2130 = vmatmul.mubr.msk.bf16.vlgmr.msra.gmra.mrb[0].mxu0 %vm353_vm1, %v2320_v19 }
  0x23   : > { %2134 = vmatpush3.bf16.msra.mxu0 %v2321_v34 }
  0x24   : > { %1672 = vperm.xlu0 %2318, %v1638_v22   ;;  %2143 = vmatprep.subr.bf16.mxu0 %v2448_v36  ;;  %v491_v22 = vand.u32 7, %v2542_v11 }
  0x26   : > { %vm2585_vm6 = vcmp.ne.s32.totalorder %v491_v22, 0 }
  0x27   : > { %vm610_vm10 = vmpackc.low %vm2585_vm6, %vm2585_vm6 }
  0x28   : > { %1677 = vperm.xlu0 %2318, %v1639_v23   ;;  %v498_v23 = vand.u32 7, %v2545_v12  ;;  %v618_v1 = vsel %vm610_vm10, 65537, %v2344_v2 }
  0x2a   : > { %vm2591_vm7 = vcmp.ne.s32.totalorder %v498_v23, 0 }
  0x2b   : > { %vm611_vm13 = vmpackc.low %vm2591_vm7, %vm2591_vm7  ;;  %vm2687_vm7 = vcmp.ne.s32.totalorder %v484_v0, 7  ;;  %v2705_v0 = vld [vmem:[%s2951_s3 + $0x28] sm:$0xff]  }
  0x87   : > { %v341_v24 = vpop.permute.xlu0 %340 }
  0x8b   : > { %v346_v28 = vpop.permute.xlu0 %345 }
  0xf5   : > { %v391_v25 = vpop.f32.mrb[0].mxu0 }
  0xf6   : > { %v2131_v26 = vpop.f32.mrb[1].mxu0  ;;  %v392_v27 = vadd.f32 %v391_v25, %v341_v24 }
  0xf7   : > { %v394_v29 = vpop.f32.mrb[2].mxu0  ;;  %v616_v26 = vsel %vm608_vm3, 65537, %v2344_v2  ;;  %vm2647_vm3 = vcmp.ne.s32.totalorder %v463_v46, 7 }
  0xf8   : > { %v395_v30 = vadd.f32 %v394_v29, %v346_v28  ;;  %v2132_v31 = vpop.f32.mrb[3].mxu0  ;;  %v398_v32 = vmax.f32 %v392_v27, 0.0  ;;  %v617_v27 = vsel %vm609_vm4, 65537, %v2344_v2  ;;  %vm2657_vm4 = vcmp.ne.s32.totalorder %v470_v47, 7  ;;  %vm685_vm6 = vmpackc.low %vm2647_vm3, %vm2647_vm3 }
  0xfa   : > { %400 = vxpose.xlu1.b32.start [1/2] (short) (narrow) %v398_v32, 64  ;;  %v399_v33 = vmax.f32 %v395_v30, 0.0  ;;  %v693_v32 = vsel %vm685_vm6, 65537, %v2344_v2  ;;  %vm656_vm6 = vcmask 1047552  }
  0xfe   : > { %401 = vxpose.xlu1.b32.end [2/2] (short) (narrow) %v399_v33, 64  ;;  %v1966_v33 = vcombine.low %v616_v26, %v617_v27 }
 0x100   : > { %vm634_vm15 = vcmp.ne.s16.totalorder %v1966_v33, 0 }
 0x11c   : > { %2319 = vset.pattern.permute.xlu1 %v2344_v2 }
 0x17a   : > { %v416_v45 = vpop.trf.xlu1 }
 0x17e   : > { %v417_v48 = vpop.trf.xlu1 }
 0x17f   : > { %v2486_v52 = vpack.c.bf16 %v417_v48, %v416_v45 }
 0x181   : > { %v543_v56 = vshrl.u32 %v2486_v52, 16  ;;  %v741_v57 = vrot.slane %v2486_v52, 4  ;;  %v546_v62 = vshll.u32 %v2486_v52, 16 }
 0x182   : > { %v418_v58 = vpop.trf.xlu1 }
 0x183   : > { %v545_v61 = vrot.slane %v543_v56, 7  ;;  %v2511_v63 = vsel %vm723_vm9, 0, %v741_v57  ;;  %v641_v44 = vrot.slane %v546_v62, 1 }
 0x184   : > { %2135 = vmatprep.mubr.msk.bf16.mxu0 %vm778_vm11, %v2511_v63 }
 0x185   : > { %v548_v3 = vor.u32 %v546_v62, %v545_v61 }
 0x186   : > { %v419_v6 = vpop.trf.xlu1 }
 0x187   : > { %v579_v8 = vsel %vm2515_vm14, 0, %v548_v3  ;;  %v2533_v9 = vpack.c.bf16 %v419_v6, %v418_v58  ;;  %vm2626_vm14 = vcmp.ne.s32.totalorder %v456_v42, 7  ;;  %v619_v3 = vsel %vm611_vm13, 65537, %v2344_v2 }
 0x188   : > { %v636_v17 = vsel %vm632_vm0, %v579_v8, 0  ;;  %vm683_vm0 = vmpackc.low %vm2605_vm12, %vm2605_vm12  ;;  %v1967_v10 = vcombine.low %v618_v1, %v619_v3 }
 0x189   : > { %v550_v14 = vshrl.u32 %v2533_v9, 16  ;;  %v742_v15 = vrot.slane %v2533_v9, 4  ;;  %v553_v20 = vshll.u32 %v2533_v9, 16  ;;  %v724_v28 = vrot.slane %v636_v17, 4  ;;  %vm684_vm2 = vmpackc.low %vm2626_vm14, %vm2626_vm14 }
 0x18a   : > { %v420_v16 = vpop.trf.xlu1  ;;  %v692_v17 = vsel %vm684_vm2, 65537, %v2344_v2  ;;  %vm2691_vm10 = vcmp.ne.s16.totalorder %v1967_v10, 0  ;;  %vm686_vm12 = vmpackc.low %vm2657_vm4, %vm2657_vm4  ;;  %vm640_vm14 = vsmask.f32 7424  ;;  %vm2749_vm2 = vcmp.ne.s32.totalorder %v498_v23, 7 }
 0x18b   : > { %v552_v19 = vrot.slane %v550_v14, 7  ;;  %v2564_v21 = vsel %vm723_vm9, %v741_v57, %v742_v15  ;;  %v734_v48 = vsel %vm723_vm9, 0, %v724_v28  ;;  %v643_v53 = vrot.slane %v553_v20, 1  ;;  %vm690_vm4 = vmpackc.low %vm2749_vm2, %vm2749_vm2 }
 0x18c   : > { %2136 = vmatmul.mubr.msk.bf16.vlgmr.msra.gmra.mrb[4].mxu0 %vm778_vm11, %v2564_v21  ;;  %v1035_v39 = vrot.slane %v734_v48, 4  ;;  %v694_v33 = vsel %vm686_vm12, 65537, %v2344_v2  ;;  %v1141_v23 = vrot.slane %v2564_v21, 4 }
 0x18d   : > { %v555_v25 = vor.u32 %v553_v20, %v552_v19  ;;  %2144 = vmatpush3.bf16.msra.mxu0 %v2448_v36  ;;  %v642_v20 = vor.u32 %v641_v44, %v543_v56 }
 0x18e   : > { %v421_v29 = vpop.trf.xlu1  ;;  %2153 = vmatprep.subr.bf16.mxu0 %v2558_v18 }
 0x18f   : > { %v556_v30 = vsel %vm541_vm8, %v545_v61, %v555_v25  ;;  %v2581_v31 = vpack.c.bf16 %v421_v29, %v420_v16  ;;  %v691_v16 = vsel %vm683_vm0, 65537, %v2344_v2  ;;  %vm2734_vm0 = vcmp.ne.s32.totalorder %v491_v22, 7 }
 0x190   : > { %v637_v35 = vsel %vm2570_vm5, %v556_v30, 0  ;;  %vm2671_vm5 = vcmp.ne.s32.totalorder %v477_v59, 7  ;;  %v1968_v27 = vcombine.low %v691_v16, %v692_v17  ;;  %vm689_vm3 = vmpackc.low %vm2734_vm0, %vm2734_vm0 }
 0x191   : > { %v558_v36 = vshrl.u32 %v2581_v31, 16  ;;  %v744_v38 = vrot.slane %v2581_v31, 4  ;;  %v725_v45 = vrot.slane %v637_v35, 4  ;;  %v561_v55 = vshll.u32 %v2581_v31, 16  ;;  %vm687_vm13 = vmpackc.low %vm2671_vm5, %vm2671_vm5 }
 0x192   : > { %v422_v50 = vpop.trf.xlu1  ;;  %v644_v35 = vsel %vm640_vm14, %v642_v20, %v643_v53 }
 0x193   : > { %v560_v54 = vrot.slane %v558_v36, 7  ;;  %v2613_v57 = vsel %vm723_vm9, %v742_v15, %v744_v38  ;;  %v2619_v58 = vsel %vm723_vm9, %v724_v28, %v725_v45  ;;  %v646_v22 = vrot.slane %v561_v55, 1 }
 0x194   : > { %2139 = vmatprep.mubr.msk.bf16.mxu0 %vm778_vm11, %v2613_v57  ;;  %v1036_v41 = vrot.slane %v2619_v58, 4  ;;  %v1143_v31 = vrot.slane %v2613_v57, 4 }
 0x195   : > { %v563_v61 = vor.u32 %v561_v55, %v560_v54  ;;  %v648_v3 = vor.u32 %v646_v22, %v558_v36 }
 0x196   : > { %v423_v4 = vpop.trf.xlu1  ;;  %v1037_v5 = vsel %vm723_vm9, %v1035_v39, %v1036_v41 }
 0x197   : > { %v564_v40 = vsel %vm541_vm8, %v552_v19, %v563_v61  ;;  %v2639_v42 = vpack.c.bf16 %v423_v4, %v422_v50  ;;  %2165 = vmatprep.mubr.msk.bf16.mxu1 %vm778_vm11, %v1037_v5  ;;  %v1969_v50 = vcombine.low %v693_v32, %v694_v33  ;;  %v698_v5 = vsel %vm690_vm4, 65537, %v2344_v2  ;;  %v2328_v32 = vld [vmem:[%s2951_s3 + $0x38] sm:$0xff]  }
 0x198   : > { %v638_v6 = vsel %vm634_vm15, %v564_v40, 0  ;;  %vm688_vm15 = vmpackc.low %vm2687_vm7, %vm2687_vm7 }
 0x199   : > { %v727_v8 = vrot.slane %v638_v6, 4  ;;  %v566_v13 = vshrl.u32 %v2639_v42, 16  ;;  %v746_v15 = vrot.slane %v2639_v42, 4  ;;  %v569_v46 = vshll.u32 %v2639_v42, 16 }
 0x19a   : > { %vm2784_vm5 = vcmp.ne.s16.totalorder %v1969_v50, 0 }
 0x19b   : > { %v568_v43 = vrot.slane %v566_v13, 7  ;;  %v2667_v24 = vsel %vm723_vm9, %v744_v38, %v746_v15  ;;  %v2680_v47 = vsel %vm723_vm9, %v725_v45, %v727_v8  ;;  %v696_v38 = vsel %vm688_vm15, 65537, %v2344_v2 }
 0x19c   : > { %2140 = vmatmul.mubr.msk.bf16.gmra.mrb[8].mxu0 %vm778_vm11, %v2667_v24  ;;  %v1038_v26 = vrot.slane %v2680_v47, 4  ;;  %v649_v60 = vrot.slane %v569_v46, 1  ;;  %v1145_v10 = vrot.slane %v2667_v24, 4  ;;  %v751_v25 = vsel %vm723_vm9, %v746_v15, 0 }
 0x19d   : > { %v571_v62 = vor.u32 %v569_v46, %v568_v43  ;;  %2145 = vmatprep.mubr.msk.bf16.mxu0 %vm778_vm11, %v734_v48  ;;  %v1144_v46 = vsel %vm723_vm9, %v1141_v23, %v1143_v31 }
 0x19e   : > { %v1039_v29 = vsel %vm723_vm9, %v1036_v41, %v1038_v26  ;;  %v1140_v41 = vrot.slane %v2511_v63, 4  ;;  %v650_v6 = vsel %vm640_vm14, %v648_v3, %v649_v60  ;;  %v651_v36 = vor.u32 %v649_v60, %v566_v13  ;;  %v2327_v13 = vld [vmem:[%s2951_s3 + $0x30] sm:$0xff]  }
 0x19f   : > { %v572_v28 = vsel %vm541_vm8, %v560_v54, %v571_v62  ;;  %2166 = vmatmul.mubr.msk.bf16.vlgmr.msra.gmra.mrb[0].mxu1 %vm778_vm11, %v1039_v29  ;;  %vm2728_vm8 = vcmp.ne.s16.totalorder %v1968_v27, 0  ;;  %v645_v54 = vor.u32 %v643_v53, %v550_v14  ;;  %v1146_v44 = vsel %vm723_vm9, %v1143_v31, %v1145_v10 }
 0x1a0   : > { %v639_v30 = vsel %vm2691_vm10, %v572_v28, 0  ;;  %2174 = vmatpush3.bf16.msra.mxu1 %v2453_v37  ;;  %v695_v37 = vsel %vm687_vm13, 65537, %v2344_v2  ;;  %v715_v55 = vsel %vm2728_vm8, %v644_v35, 0  ;;  %v1142_v63 = vsel %vm723_vm9, %v1140_v41, %v1141_v23  ;;  %vm2806_vm10 = vmand %vm656_vm6, %vm640_vm14 }
 0x1a1   : > { %v729_v34 = vrot.slane %v639_v30, 4  ;;  %2183 = vmatprep.subr.bf16.mxu1 %v2705_v0  ;;  %v1970_v39 = vcombine.low %v695_v37, %v696_v38  ;;  %v647_v14 = vsel %vm640_vm14, %v645_v54, %v646_v22  ;;  %v756_v4 = vrot.slane %v715_v55, 4  ;;  %v2329_v37 = vld [vmem:[%s2951_s3 + $0x40] sm:$0xff]  }
 0x1a2   : > { %v716_v40 = vsel %vm2784_vm5, %v647_v14, 0  ;;  %v658_v43 = vsel %vm2806_vm10, %v651_v36, 0 }
 0x1a3   : > { %v2756_v45 = vsel %vm723_vm9, %v727_v8, %v729_v34  ;;  %v2759_v48 = vsel %vm723_vm9, %v729_v34, 0  ;;  %vm2798_vm7 = vcmp.ne.s16.totalorder %v1970_v39, 0  ;;  %v764_v16 = vsel %vm723_vm9, 0, %v756_v4 }
 0x1a4   : > { %2146 = vmatmul.mubr.msk.bf16.vlgmr.msra.gmra.mrb[4].mxu0 %vm778_vm11, %v2619_v58  ;;  %v1040_v51 = vrot.slane %v2756_v45, 4  ;;  %v1042_v12 = vrot.slane %v2759_v48, 4  ;;  %v757_v17 = vrot.slane %v716_v40, 4  ;;  %v717_v19 = vsel %vm2798_vm7, %v650_v6, 0 }
 0x1a5   : > { %2149 = vmatprep.mubr.msk.bf16.mxu0 %vm778_vm11, %v2680_v47  ;;  %2154 = vmatpush3.bf16.msra.mxu0 %v2558_v18  ;;  %v697_v18 = vsel %vm689_vm3, 65537, %v2344_v2  ;;  %v759_v49 = vrot.slane %v717_v19, 4  ;;  %v1245_v53 = vrot.slane %v764_v16, 4 }
 0x1a6   : > { %v1041_v61 = vsel %vm723_vm9, %v1038_v26, %v1040_v51  ;;  %v1043_v9 = vsel %vm723_vm9, %v1040_v51, %v1042_v12  ;;  %v1971_v8 = vcombine.low %v697_v18, %v698_v5  ;;  %v758_v59 = vsel %vm723_vm9, %v756_v4, %v757_v17  ;;  %v2033_v51 = vld [vmem:[%s2952_s4] ss:$0 sm:$0xff] }
 0x1a7   : > { %2169 = vmatprep.mubr.msk.bf16.mxu1 %vm778_vm11, %v1041_v61  ;;  %v1147_v26 = vrot.slane %v751_v25, 4  ;;  %v760_v42 = vsel %vm723_vm9, %v757_v17, %v759_v49  ;;  %v1246_v27 = vrot.slane %v758_v59, 4 }
 0x1a8   : > { %2170 = vmatmul.mubr.msk.bf16.gmra.mrb[4].mxu1 %vm778_vm11, %v1043_v9  ;;  %vm714_vm12 = vcmp.ne.s16.totalorder %v1971_v8, 0  ;;  %v1248_v20 = vrot.slane %v760_v42, 4 }
 0x1a9   : > { %2175 = vmatprep.mubr.msk.bf16.mxu1 %vm778_vm11, %v1142_v63  ;;  %v718_v62 = vsel %vm714_vm12, %v658_v43, 0  ;;  %v1148_v28 = vsel %vm723_vm9, %v1145_v10, %v1147_v26 }
 0x1aa   : > { %v761_v15 = vrot.slane %v718_v62, 4  ;;  %v1249_v33 = vsel %vm723_vm9, %v1246_v27, %v1248_v20 }
 0x1ac   : > { %2150 = vmatmul.mubr.msk.bf16.gmra.mrb[8].mxu0 %vm778_vm11, %v2756_v45  ;;  %v762_v29 = vsel %vm723_vm9, %v759_v49, %v761_v15  ;;  %v766_v52 = vsel %vm723_vm9, %v761_v15, 0 }
 0x1ad   : > { %2155 = vmatprep.mubr.msk.bf16.mxu0 %vm778_vm11, %v764_v16  ;;  %v1250_v30 = vrot.slane %v762_v29, 4  ;;  %v1252_v56 = vrot.slane %v766_v52, 4 }
 0x1af   : > { %v1251_v34 = vsel %vm723_vm9, %v1248_v20, %v1250_v30  ;;  %v1253_v35 = vsel %vm723_vm9, %v1250_v30, %v1252_v56 }
 0x1b0   : > { %2176 = vmatmul.mubr.msk.bf16.vlgmr.msra.gmra.mrb[0].mxu1 %vm778_vm11, %v1144_v46 }
 0x1b1   : > { %2184 = vmatpush3.bf16.msra.mxu1 %v2705_v0  ;;  %2179 = vmatprep.mubr.msk.bf16.mxu1 %vm778_vm11, %v1146_v44  ;;  %v1247_v0 = vsel %vm723_vm9, %v1245_v53, %v1246_v27  ;;  %v2331_v53 = vld [vmem:[%s2953_s5 + $0x8] sm:$0xff]   ;;  %vm1854_vm9 = vcmask 519168  }
 0x1b2   : > { %2193 = vmatprep.subr.bf16.mxu1 %v2327_v13 }
 0x1b4   : > { %2156 = vmatmul.mubr.msk.bf16.vlgmr.msra.gmra.mrb[4].mxu0 %vm778_vm11, %v758_v59 }
 0x1b5   : > { %2159 = vmatprep.mubr.msk.bf16.mxu0 %vm778_vm11, %v760_v42 }
 0x1b8   : > { %2180 = vmatmul.mubr.msk.bf16.gmra.mrb[4].mxu1 %vm778_vm11, %v1148_v28  ;;  %v2332_v28 = vld [vmem:[%s2953_s5 + $0x10] sm:$0xff]  }
 0x1b9   : > { %2185 = vmatprep.mubr.msk.bf16.mxu1 %vm778_vm11, %v1247_v0  ;;  %v2333_v0 = vld [vmem:[%s2953_s5 + $0x18] sm:$0xff]  }
 0x1bc   : > { %2160 = vmatmul.mubr.msk.bf16.gmra.mrb[8].mxu0 %vm778_vm11, %v762_v29 }
 0x1c0   : > { %2186 = vmatmul.mubr.msk.bf16.vlgmr.msra.gmra.mrb[0].mxu1 %vm778_vm11, %v1249_v33 }
 0x1c1   : > { %2194 = vmatpush3.bf16.msra.mxu1 %v2327_v13  ;;  %2189 = vmatprep.mubr.msk.bf16.mxu1 %vm778_vm11, %v1251_v34 }
 0x1c2   : > { %2203 = vmatprep.subr.bf16.mxu1 %v2328_v32 }
 0x1c8   : > { %2190 = vmatmul.mubr.msk.bf16.gmra.mrb[4].mxu1 %vm778_vm11, %v1253_v35 }
 0x1c9   : > { %2195 = vmatprep.mubr.msk.bf16.mxu1 %vm778_vm11, %v2619_v58 }
 0x1d0   : > { %2196 = vmatmul.mubr.msk.bf16.vlgmr.msra.gmra.mrb[0].mxu1 %vm778_vm11, %v2680_v47 }
 0x1d1   : > { %2204 = vmatpush3.bf16.msra.mxu1 %v2328_v32  ;;  %2199 = vmatprep.mubr.msk.bf16.mxu1 %vm778_vm11, %v2756_v45 }
 0x1d2   : > { %2213 = vmatprep.subr.bf16.mxu1 %v2329_v37 }
 0x1d8   : > { %2200 = vmatmul.mubr.msk.bf16.gmra.mrb[4].mxu1 %vm778_vm11, %v2759_v48 }
 0x1d9   : > { %2205 = vmatprep.mubr.msk.bf16.mxu1 %vm778_vm11, %v2564_v21  ;;  %v2330_v21 = vld [vmem:[%s2953_s5] sm:$0xff]  }
 0x1da   : > { %2231 = vmatprep.mubr.msk.bf16.mxu0 %vm778_vm11, %v2330_v21 }
 0x1e0   : > { %2206 = vmatmul.mubr.msk.bf16.vlgmr.msra.gmra.mrb[0].mxu1 %vm778_vm11, %v2613_v57  ;;  %v1633_v57 = vld [vmem:[%s2954_s6 + $0x8] sm:$0xff] }
 0x1e1   : > { %2214 = vmatpush3.bf16.msra.mxu1 %v2329_v37  ;;  %2209 = vmatprep.mubr.msk.bf16.mxu1 %vm778_vm11, %v2667_v24 }
 0x1e2   : > { %1647 = vperm.xlu1 %2319, %v1633_v57  }
 0x1e8   : > { %2210 = vmatmul.mubr.msk.bf16.gmra.mrb[4].mxu1 %vm778_vm11, %v751_v25 }
 0x1e9   : > { %2215 = vmatprep.mubr.msk.bf16.mxu1 %vm778_vm11, %v758_v59 }
 0x1f0   : > { %2216 = vmatmul.mubr.msk.bf16.vlgmr.msra.gmra.mrb[0].mxu1 %vm778_vm11, %v760_v42 }
 0x1f1   : > { %2219 = vmatprep.mubr.msk.bf16.mxu1 %vm778_vm11, %v762_v29  ;;  %v1643_v29 = vpop.permute.xlu0 %1642 }
 0x1f5   : > { %v1653_v20 = vpop.permute.xlu0 %1652 }
 0x1f8   : > { %2220 = vmatmul.mubr.msk.bf16.gmra.mrb[4].mxu1 %vm778_vm11, %v766_v52 }
 0x1f9   : > { %v1658_v30 = vpop.permute.xlu0 %1657 }
 0x1fd   : > { %v1663_v32 = vpop.permute.xlu0 %1662 }
 0x201   : > { %v1668_v33 = vpop.permute.xlu0 %1667 }
 0x261   : > { %v1648_v35 = vpop.permute.xlu1 %1647 }
 0x287   : > { %v2157_v58 = vpop.f32.mrb[4].mxu0 }
 0x288   : > { %v991_v24 = vpop.f32.mrb[5].mxu0 }
 0x289   : > { %v2158_v47 = vpop.f32.mrb[6].mxu0 }
 0x28a   : > { %v994_v38 = vpop.f32.mrb[7].mxu0 }
 0x28f   : > { %v2161_v11 = vpop.f32.mrb[8].mxu0 }
 0x290   : > { %v1007_v22 = vpop.f32.mrb[9].mxu0 }
 0x291   : > { %v2162_v45 = vpop.f32.mrb[10].mxu0 }
 0x292   : > { %v1010_v48 = vpop.f32.mrb[11].mxu0 }
 0x2c3   : > { %v2217_v50 = vpop.f32.mrb[0].mxu1 }
 0x2c4   : > { %v2239_v12 = vadd.f32 %v2217_v50, %v2157_v58  ;;  %v1558_v23 = vpop.f32.mrb[1].mxu1 }
 0x2c5   : > { %v2240_v54 = vadd.f32 %v1558_v23, %v991_v24  ;;  %v2218_v55 = vpop.f32.mrb[2].mxu1 }
 0x2c6   : > { %v1606_v39 = vadd.f32 %v2239_v12, %v2033_v51  ;;  %v2241_v41 = vadd.f32 %v2218_v55, %v2158_v47  ;;  %v1561_v60 = vpop.f32.mrb[3].mxu1  ;;  %v1673_v47 = vpop.permute.xlu0 %1672 }
 0x2c7   : > { %v1604_v61 = vadd.f32 %v2240_v54, %v2033_v51  ;;  %v2242_v9 = vadd.f32 %v1561_v60, %v994_v38 }
 0x2c8   : > { %v1607_v14 = vadd.f32 %v2241_v41, %v2033_v51  ;;  %v1614_v18 = vmax.f32 %v1606_v39, 0.0 }
 0x2c9   : > { %v1605_v1 = vadd.f32 %v2242_v9, %v2033_v51  ;;  %v1612_v63 = vmax.f32 %v1604_v61, 0.0 }
 0x2ca   : > { %v1615_v3 = vmax.f32 %v1607_v14, 0.0  ;;  %v1678_v55 = vpop.permute.xlu0 %1677 }
 0x2cb   : > { %v1613_v4 = vmax.f32 %v1605_v1, 0.0  ;;  %v2221_v5 = vpop.f32.mrb[4].mxu1 }
 0x2cc   : > { %v1621_v40 = vpack.c.bf16 %v1615_v3, %v1614_v18  ;;  %v2243_v6 = vadd.f32 %v2221_v5, %v2161_v11  ;;  %v1574_v7 = vpop.f32.mrb[5].mxu1 }
 0x2cd   : > { %v1620_v31 = vpack.c.bf16 %v1613_v4, %v1612_v63  ;;  %v2244_v36 = vadd.f32 %v1574_v7, %v1007_v22  ;;  %v2222_v8 = vpop.f32.mrb[6].mxu1 }
 0x2ce   : > { %v1610_v2 = vadd.f32 %v2243_v6, %v2033_v51  ;;  %v2245_v10 = vadd.f32 %v2222_v8, %v2162_v45  ;;  %v1577_v16 = vpop.f32.mrb[7].mxu1  ;;  %v1716_v42 = vsel %vm778_vm11, %v1621_v40, 0 }
 0x2cf   : > { %v1608_v17 = vadd.f32 %v2244_v36, %v2033_v51  ;;  %v2246_v19 = vadd.f32 %v1577_v16, %v1010_v48  ;;  %2303 = vmatprep.subr.msk.bf16.mxu0 %vm778_vm11, %v1620_v31  ;;  %v1713_v13 = vsel %vm778_vm11, %v1620_v31, 0 }
 0x2d0   : > { %v1611_v43 = vadd.f32 %v2245_v10, %v2033_v51  ;;  %2224 = vmatpush3.bf16.xpose.msra.mxu0 %v1713_v13  ;;  %v1618_v25 = vmax.f32 %v1610_v2, 0.0 }
 0x2d1   : > { %v1609_v46 = vadd.f32 %v2246_v19, %v2033_v51  ;;  %2304 = vmatprep.subr.msk.bf16.mxu0 %vm778_vm11, %v1621_v40  ;;  %v1616_v49 = vmax.f32 %v1608_v17, 0.0 }
 0x2d2   : > { %v1619_v44 = vmax.f32 %v1611_v43, 0.0 }
 0x2d3   : > { %v1617_v59 = vmax.f32 %v1609_v46, 0.0 }
 0x2d4   : > { %v1623_v62 = vpack.c.bf16 %v1619_v44, %v1618_v25 }
 0x2d5   : > { %v1622_v26 = vpack.c.bf16 %v1617_v59, %v1616_v49 }
 0x2d6   : > { %v1722_v15 = vsel %vm778_vm11, %v1623_v62, 0 }
 0x2d7   : > { %v1719_v27 = vsel %vm778_vm11, %v1622_v26, 0 }
 0x2d8   : > { %2226 = vmatpush3.bf16.xpose.msra.mxu0 %v1716_v42 }
 0x2d9   : > { %2305 = vmatprep.subr.msk.bf16.mxu0 %vm778_vm11, %v1622_v26 }
 0x2e0   : > { %2228 = vmatpush3.bf16.xpose.msra.mxu0 %v1719_v27 }
 0x2e1   : > { %2306 = vmatprep.subr.msk.bf16.mxu0 %vm778_vm11, %v1623_v62 }
 0x2e8   : > { %2230 = vmatpush3.bf16.xpose.msra.mxu0 %v1722_v15 }
 0x2ef   : > { %2232 = vmatmul.mubr.msk.bf16.vlgmr.msra.gmra.mrb[12].mxu0 %vm778_vm11, %v2331_v53 }
 0x2f0   : > { %2235 = vmatprep.mubr.msk.bf16.mxu0 %vm778_vm11, %v2332_v28 }
 0x2f7   : > { %2236 = vmatmul.mubr.msk.bf16.gmra.mrb[16].mxu0 %vm778_vm11, %v2333_v0  ;;  %vm1813_vm11 = vcmask 7168  }
 0x3c2   : > { %v2233_v34 = vpop.f32.mrb[12].mxu0 }
 0x3c3   : > { %v1767_v52 = vadd.f32 %v2233_v34, %v1653_v20  ;;  %v1758_v56 = vpop.f32.mrb[13].mxu0 }
 0x3c4   : > { %v1759_v37 = vadd.f32 %v1758_v56, %v1643_v29  ;;  %v2234_v21 = vpop.f32.mrb[14].mxu0 }
 0x3c5   : > { %v2057_v57 = vpack.c.bf16 %v1767_v52, %v1767_v52  ;;  %v1770_v58 = vadd.f32 %v2234_v21, %v1658_v30  ;;  %v1761_v24 = vpop.f32.mrb[15].mxu0  ;;  %v1795_v12 = vsel %vm353_vm1, %v1767_v52, 0.0 }
 0x3c6   : > { %v2055_v38 = vpack.c.bf16 %v1759_v37, %v1759_v37  ;;  %v1762_v11 = vadd.f32 %v1761_v24, %v1648_v35  ;;  %v1789_v22 = vsel %vm353_vm1, %v1759_v37, 0.0 }
 0x3c7   : > { %1857 = vst.msk [vmem:[%s2906_s26 + $0x8] sm:$0xf] %vm1854_vm9, %v2057_v57  ;;  %v2058_v45 = vpack.c.bf16 %v1770_v58, %v1770_v58  ;;  %1790 = vadd.xlane.f32.xlu0 %v1789_v22  ;;  %v1798_v18 = vsel %vm353_vm1, %v1770_v58, 0.0 }
 0x3c8   : > { %1855 = vst.msk [vmem:[%s2906_s26] sm:$0xf] %vm1854_vm9, %v2055_v38  ;;  %v2056_v48 = vpack.c.bf16 %v1762_v11, %v1762_v11  ;;  %v1792_v50 = vsel %vm353_vm1, %v1762_v11, 0.0 }
 0x3c9   : > { %1858 = vst.msk [vmem:[%s2906_s26 + $0xc] sm:$0xf] %vm1854_vm9, %v2058_v45  ;;  %1793 = vadd.xlane.f32.xlu1 %v1792_v50 }
 0x3ca   : > { %1856 = vst.msk [vmem:[%s2906_s26 + $0x4] sm:$0xf] %vm1854_vm9, %v2056_v48  ;;  %v2237_v51 = vpop.f32.mrb[16].mxu0 }
 0x3cb   : > { %v1783_v23 = vadd.f32 %v2237_v51, %v1673_v47  ;;  %v1774_v54 = vpop.f32.mrb[17].mxu0  ;;  %1796 = vadd.xlane.f32.xlu0 %v1795_v12 }
 0x3cc   : > { %v1775_v39 = vadd.f32 %v1774_v54, %v1663_v32  ;;  %v2238_v41 = vpop.f32.mrb[18].mxu0 }
 0x3cd   : > { %v2061_v60 = vpack.c.bf16 %v1783_v23, %v1783_v23  ;;  %v1786_v61 = vadd.f32 %v2238_v41, %v1678_v55  ;;  %v1777_v9 = vpop.f32.mrb[19].mxu0  ;;  %v1807_v4 = vsel %vm353_vm1, %v1783_v23, 0.0 }
 0x3ce   : > { %v2059_v14 = vpack.c.bf16 %v1775_v39, %v1775_v39  ;;  %v1778_v1 = vadd.f32 %v1777_v9, %v1668_v33  ;;  %v1801_v5 = vsel %vm353_vm1, %v1775_v39, 0.0 }
 0x3cf   : > { %1861 = vst.msk [vmem:[%s2906_s26 + $0x18] sm:$0xf] %vm1854_vm9, %v2061_v60  ;;  %v2062_v3 = vpack.c.bf16 %v1786_v61, %v1786_v61  ;;  %1799 = vadd.xlane.f32.xlu0 %v1798_v18  ;;  %v1810_v6 = vsel %vm353_vm1, %v1786_v61, 0.0 }
 0x3d0   : > { %1859 = vst.msk [vmem:[%s2906_s26 + $0x10] sm:$0xf] %vm1854_vm9, %v2059_v14  ;;  %v2060_v63 = vpack.c.bf16 %v1778_v1, %v1778_v1  ;;  %v1804_v40 = vsel %vm353_vm1, %v1778_v1, 0.0 }
 0x3d1   : > { %1862 = vst.msk [vmem:[%s2906_s26 + $0x1c] sm:$0xf] %vm1854_vm9, %v2062_v3 }
 0x3d2   : > { %1860 = vst.msk [vmem:[%s2906_s26 + $0x14] sm:$0xf] %vm1854_vm9, %v2060_v63 }
 0x3d3   : > { %1808 = vadd.xlane.f32.xlu0 %v1807_v4 }
 0x3d7   : > { %1802 = vadd.xlane.f32.xlu0 %v1801_v5 }
 0x3db   : > { %1805 = vadd.xlane.f32.xlu0 %v1804_v40 }
 0x3df   : > { %1811 = vadd.xlane.f32.xlu0 %v1810_v6 }
 0x454   : > { %v1791_v7 = vpop.xlane.xlu0 %1790 }
 0x455   : > { %1814 = vst.msk [vmem:[%s318_s10] sm:$0xff] %vm1813_vm11, %v1791_v7 }
 0x456   : > { %v1794_v31 = vpop.xlane.xlu1 %1793 }
 0x457   : > { %1815 = vst.msk [vmem:[%s318_s10 + $0x8] sm:$0xff] %vm1813_vm11, %v1794_v31 }
 0x458   : > { %v1797_v36 = vpop.xlane.xlu0 %1796 }
 0x459   : > { %1816 = vst.msk [vmem:[%s318_s10 + $0x10] sm:$0xff] %vm1813_vm11, %v1797_v36 }
 0x45c   : > { %v1800_v8 = vpop.xlane.xlu0 %1799 }
 0x45d   : > { %1817 = vst.msk [vmem:[%s318_s10 + $0x18] sm:$0xff] %vm1813_vm11, %v1800_v8 }
 0x460   : > { %v1809_v2 = vpop.xlane.xlu0 %1808 }
 0x461   : > { %1820 = vst.msk [vmem:[%s318_s10 + $0x30] sm:$0xff] %vm1813_vm11, %v1809_v2 }
 0x464   : > { %v1803_v10 = vpop.xlane.xlu0 %1802 }
 0x465   : > { %1818 = vst.msk [vmem:[%s318_s10 + $0x20] sm:$0xff] %vm1813_vm11, %v1803_v10 }
 0x468   : > { %v1806_v16 = vpop.xlane.xlu0 %1805 }
 0x469   : > { %1819 = vst.msk [vmem:[%s318_s10 + $0x28] sm:$0xff] %vm1813_vm11, %v1806_v16 }
 0x46c   : > { %v1812_v17 = vpop.xlane.xlu0 %1811 }
 0x46d   : > { %1821 = vst.msk [vmem:[%s318_s10 + $0x38] sm:$0xff] %vm1813_vm11, %v1812_v17 }
 0x46e PF: > { %s19_s27 = sadd.s32 1, %s2340_s27  }
 0x46f   : > { %p16_p4 = scmp.ge.s32.totalorder %s19_s27, 4  }
 0x471   :  { %18 = sbr.rel (!%p16_p4) target bundleno = 1 (0x1), region = 98 }

</bundles_post_ra>
